<compile_context>
chip_gen: v6e
topology: v6e:2x2x1
jax: 0.10.0
libtpu: 0.0.40
codegen_flags: <defaults>
</compile_context>

<pallas_src>
import functools

import numpy as np
import jax
import jax.numpy as jnp
from jax import lax
from jax.experimental import pallas as pl
from jax.experimental.pallas import tpu as pltpu


# ----------------------------- Pallas kernel --------------------------------

def _gru_cell(gi, h, whh_ref, bhh_ref):
    """One GRU cell update. gi: (B, 3H) f32 precomputed input gates."""
    H = h.shape[-1]
    gh = jnp.dot(h.astype(whh_ref.dtype), whh_ref[...],
                 preferred_element_type=jnp.float32) + bhh_ref[...]
    r = jax.nn.sigmoid(gi[:, 0:H] + gh[:, 0:H])
    z = jax.nn.sigmoid(gi[:, H:2 * H] + gh[:, H:2 * H])
    n = jnp.tanh(gi[:, 2 * H:3 * H] + r * gh[:, 2 * H:3 * H])
    # n + z*(h - n): one fewer VPU op than (1 - z)*n + z*h.
    return n + z * (h - n)


def _bigru_chunk_kernel(seq_ref, xf_ref, xb_ref,
                        wih_f_ref, bih_f_ref, wih_b_ref, bih_b_ref,
                        whh_f_ref, bhh_f_ref, whh_b_ref, bhh_b_ref,
                        outf_ref, outb_ref,
                        hf_ref, hb_ref, gif_ref, gib_ref,
                        *, t_chunk, unroll):
    """One grid step = one time-chunk of the fused fwd/bwd GRU recurrence.

    seq_ref:   (B, 1)       int32 sequence lengths (padded rows = 0)
    xf_ref:    (Tc*B, H)    forward-direction x chunk   (chunk i)
    xb_ref:    (Tc*B, H)    backward-direction x chunk  (chunk nC-1-i)
    wih_*:     (H, 3H)      input weights   bih_*: (1, 3H) f32
    whh_*:     (H, 3H)      hidden weights  bhh_*: (1, 3H) f32
    outf/outb: (Tc*B, H)    per-direction output chunks (zeros at padded steps)
    hf/hb:     (B, H) f32   carried hidden state (persists across grid steps)
    gif/gib:   (Tc*B, 3H)   f32 scratch for the hoisted input projections
    """
    B, H = hf_ref.shape
    i = pl.program_id(0)
    n_chunks = pl.num_programs(0)

    @pl.when(i == 0)
    def _():
        hf_ref[...] = jnp.zeros_like(hf_ref)     # matches _init_hidden (zeros)
        hb_ref[...] = jnp.zeros_like(hb_ref)

    # --- Hoisted per-chunk input projections (throughput GEMMs, f32 accum) ---
    gif_ref[...] = (jnp.dot(xf_ref[...], wih_f_ref[...],
                            preferred_element_type=jnp.float32)
                    + bih_f_ref[...])
    gib_ref[...] = (jnp.dot(xb_ref[...], wih_b_ref[...],
                            preferred_element_type=jnp.float32)
                    + bih_b_ref[...])

    seq = seq_ref[...]                               # (B, 1) int32
    t0_f = i * t_chunk                               # first time step, fwd chunk
    t0_b = (n_chunks - 1 - i) * t_chunk              # first time step, bwd chunk

    # --- Fused fwd/bwd recurrence inside the chunk --------------------------
    def body(j, carry):
        hf, hb = carry
        jr = t_chunk - 1 - j
        row_f = pl.multiple_of(j * B, B)             # B == padded batch (mult of 8)
        row_b = pl.multiple_of(jr * B, B)

        mf = (seq > (t0_f + j)).astype(jnp.float32)  # (B, 1)
        mb = (seq > (t0_b + jr)).astype(jnp.float32)

        hf_new = _gru_cell(gif_ref[pl.ds(row_f, B), :], hf, whh_f_ref, bhh_f_ref)
        hb_new = _gru_cell(gib_ref[pl.ds(row_b, B), :], hb, whh_b_ref, bhh_b_ref)

        hf_next = hf + mf * (hf_new - hf)            # freeze past sequence end
        hb_next = hb + mb * (hb_new - hb)

        outf_ref[pl.ds(row_f, B), :] = mf * hf_next  # zeros at padded steps
        outb_ref[pl.ds(row_b, B), :] = mb * hb_next
        return (hf_next, hb_next)

    hf, hb = lax.fori_loop(0, t_chunk, body, (hf_ref[...], hb_ref[...]),
                           unroll=unroll)
    hf_ref[...] = hf                                 # carry to next chunk
    hb_ref[...] = hb


def _vmem_limit_bytes(blk, bp, h, mm_itemsize):
    """Explicit scoped-VMEM budget for the chunked working set (+ headroom)."""
    f32 = 4
    x_chunk = blk * h * mm_itemsize                  # one direction's x chunk
    out_chunk = blk * h * f32                        # one direction's out chunk
    gi = blk * 3 * h * f32                           # one direction's gi scratch
    weights = 4 * h * 3 * h * mm_itemsize            # w_ih_f/b + w_hh_f/b
    biases = 4 * 3 * max(h, 128) * f32               # lane-padded
    hstate = 2 * bp * h * f32
    seq = bp * 128 * 4                               # lane-padded
    total = (2 * (2 * x_chunk + 2 * out_chunk)       # double-buffered blocked I/O
             + 2 * (weights + biases + seq)          # conservative
             + 2 * gi + hstate)
    return int(min(total + (4 << 20), 64 << 20))     # headroom; cap at v7x VMEM


def bigru_pallas(x_bth, seq_lengths, params, *, t_chunk=None, unroll=4,
                 matmul_dtype=jnp.float32, sublane=8):
    """x_bth: (B, T, H) batch-first input, seq_lengths: (B,) int.

    Returns the padded bidirectional GRU output (T, B, 2H) with zeros at
    padded time steps (== pad_packed_sequence of the PyTorch forward output).
    """
    B, T, H = x_bth.shape
    Bp = ((B + sublane - 1) // sublane) * sublane
    if t_chunk is None:
        t_chunk = min(T, 8)
    t_chunk = max(1, min(t_chunk, T))
    n_chunks = pl.cdiv(T, t_chunk)
    Tp = n_chunks * t_chunk
    blk = t_chunk * Bp

    # Glue: batch-first -> time-major; pad time to a chunk multiple and batch
    # to a sublane multiple (padded rows get seq_len 0 => zero outputs).
    x_tbh = jnp.transpose(x_bth, (1, 0, 2))                       # (T, B, H)
    seq_i32 = seq_lengths.astype(jnp.int32)
    if Tp != T or Bp != B:
        x_tbh = jnp.pad(x_tbh, ((0, Tp - T), (0, Bp - B), (0, 0)))
    if Bp != B:
        seq_i32 = jnp.pad(seq_i32, (0, Bp - B))
    x2d = x_tbh.reshape(Tp * Bp, H).astype(matmul_dtype)
    seq2d = seq_i32.reshape(Bp, 1)

    mm = matmul_dtype
    w_ih_f = params["w_ih_f"].astype(mm)
    w_ih_b = params["w_ih_b"].astype(mm)
    w_hh_f = params["w_hh_f"].astype(mm)
    w_hh_b = params["w_hh_b"].astype(mm)
    b_ih_f = params["b_ih_f"]
    b_ih_b = params["b_ih_b"]
    b_hh_f = params["b_hh_f"]
    b_hh_b = params["b_hh_b"]

    const2 = lambda i: (0, 0)                        # resident weights / seq
    fwd_x = pl.BlockSpec((blk, H), lambda i: (i, 0))
    bwd_x = pl.BlockSpec((blk, H), lambda i: (n_chunks - 1 - i, 0))
    fwd_o = pl.BlockSpec((blk, H), lambda i: (i, 0))
    bwd_o = pl.BlockSpec((blk, H), lambda i: (n_chunks - 1 - i, 0))

    kernel = functools.partial(_bigru_chunk_kernel,
                               t_chunk=t_chunk,
                               unroll=min(unroll, t_chunk))

    vmem_bytes = _vmem_limit_bytes(blk, Bp, H, jnp.dtype(mm).itemsize)

    out_f, out_b = pl.pallas_call(
        kernel,
        out_shape=(jax.ShapeDtypeStruct((Tp * Bp, H), jnp.float32),
                   jax.ShapeDtypeStruct((Tp * Bp, H), jnp.float32)),
        grid_spec=pltpu.PrefetchScalarGridSpec(
            num_scalar_prefetch=0,
            grid=(n_chunks,),
            in_specs=[
                pl.BlockSpec(seq2d.shape, const2),            # seq lengths
                fwd_x, bwd_x,                                  # x, two views
                pl.BlockSpec(w_ih_f.shape, const2),
                pl.BlockSpec(b_ih_f.shape, const2),
                pl.BlockSpec(w_ih_b.shape, const2),
                pl.BlockSpec(b_ih_b.shape, const2),
                pl.BlockSpec(w_hh_f.shape, const2),
                pl.BlockSpec(b_hh_f.shape, const2),
                pl.BlockSpec(w_hh_b.shape, const2),
                pl.BlockSpec(b_hh_b.shape, const2),
            ],
            out_specs=[fwd_o, bwd_o],
            scratch_shapes=[
                pltpu.VMEM((Bp, H), jnp.float32),              # hf carry
                pltpu.VMEM((Bp, H), jnp.float32),              # hb carry
                pltpu.VMEM((blk, 3 * H), jnp.float32),         # gi fwd chunk
                pltpu.VMEM((blk, 3 * H), jnp.float32),         # gi bwd chunk
            ]),
        compiler_params=pltpu.CompilerParams(
            dimension_semantics=("arbitrary",),                # recurrence axis
            vmem_limit_bytes=vmem_bytes),
    )(seq2d, x2d, x2d,
      w_ih_f, b_ih_f, w_ih_b, b_ih_b,
      w_hh_f, b_hh_f, w_hh_b, b_hh_b)

    out_f = out_f.reshape(Tp, Bp, H)[:T, :B]
    out_b = out_b.reshape(Tp, Bp, H)[:T, :B]
    return jnp.concatenate([out_f, out_b], axis=-1)             # (T, B, 2H)


# ------------------------- parameters / reference ---------------------------

def init_params(key, input_size, hidden_size, output_size):
    k = 1.0 / np.sqrt(hidden_size)

    def u(kk, shape):
        return jax.random.uniform(kk, shape, jnp.float32, -k, k)

    keys = jax.random.split(key, 12)
    H = hidden_size
    return {
        # GRU, forward direction (pre-transposed: (H, 3H), gate order r|z|n)
        "w_ih_f": u(keys[0], (H, 3 * H)),
        "w_hh_f": u(keys[1], (H, 3 * H)),
        "b_ih_f": u(keys[2], (1, 3 * H)),
        "b_hh_f": u(keys[3], (1, 3 * H)),
        # GRU, reverse direction
        "w_ih_b": u(keys[4], (H, 3 * H)),
        "w_hh_b": u(keys[5], (H, 3 * H)),
        "b_ih_b": u(keys[6], (1, 3 * H)),
        "b_hh_b": u(keys[7], (1, 3 * H)),
        # Defined in the PyTorch module but unused by forward():
        "embedding": jax.random.normal(keys[8], (input_size, H), jnp.float32),
        "fc_w": u(keys[9], (H, output_size)),
        "fc_b": u(keys[10], (1, output_size)),
    }


def bigru_reference(x_bth, seq_lengths, p):
    """Pure-JAX reference with identical packed-sequence semantics."""
    B, T, H = x_bth.shape
    x = jnp.transpose(x_bth, (1, 0, 2))                               # (T, B, H)
    mask = (jnp.arange(T)[:, None] < seq_lengths[None, :]).astype(jnp.float32)

    def cell(x_t, h, wi, wh, bi, bh):
        gi = x_t @ wi + bi
        gh = h @ wh + bh
        r = jax.nn.sigmoid(gi[:, :H] + gh[:, :H])
        z = jax.nn.sigmoid(gi[:, H:2 * H] + gh[:, H:2 * H])
        n = jnp.tanh(gi[:, 2 * H:] + r * gh[:, 2 * H:])
        return (1.0 - z) * n + z * h

    out = np.zeros((T, B, 2 * H), np.float32)
    hf = jnp.zeros((B, H), jnp.float32)
    for t in range(T):
        m = mask[t][:, None]
        hnew = cell(x[t], hf, p["w_ih_f"], p["w_hh_f"], p["b_ih_f"], p["b_hh_f"])
        hf = hf + m * (hnew - hf)
        out[t, :, :H] = np.asarray(m * hf)
    hb = jnp.zeros((B, H), jnp.float32)
    for t in reversed(range(T)):
        m = mask[t][:, None]
        hnew = cell(x[t], hb, p["w_ih_b"], p["w_hh_b"], p["b_ih_b"], p["b_hh_b"])
        hb = hb + m * (hnew - hb)
        out[t, :, H:] = np.asarray(m * hb)
    return jnp.asarray(out)


# ---------------------------------- main -------------------------------------

if __name__ == "__main__":
    # Small shapes consistent with the module's forward:
    #   batch_first input (B, T, H) fed to pack_padded_sequence.
    B, T, H = 2, 8, 32
    input_size, output_size = 100, 10   # embedding / fc sizes (unused in forward)

    key = jax.random.PRNGKey(0)
    k_x, k_p = jax.random.split(key)

    params = init_params(k_p, input_size, H, output_size)
    x_bth = jax.random.normal(k_x, (B, T, H), jnp.float32)
    seq_lengths = jnp.array([8, 5], dtype=jnp.int32)       # sorted descending

    ref = bigru_reference(x_bth, seq_lengths, params)

    # f32 matmuls, T tiled into chunks of 3: exercises time padding (Tp=9) and
    # the hidden-state carry across grid steps.  Tight tolerance.
    run_f32 = jax.jit(lambda x, s: bigru_pallas(
        x, s, params, t_chunk=3, matmul_dtype=jnp.float32))
    out_f32 = jax.block_until_ready(run_f32(x_bth, seq_lengths))    # (T, B, 2H)
    np.testing.assert_allclose(np.asarray(out_f32), np.asarray(ref),
                               rtol=1e-5, atol=1e-5)

    # bf16 matmul operands with f32 accumulation / f32 elementwise math:
    # looser tolerance against the f32 reference.
    run_bf16 = jax.jit(lambda x, s: bigru_pallas(
        x, s, params, t_chunk=4, matmul_dtype=jnp.bfloat16))
    out_bf16 = jax.block_until_ready(run_bf16(x_bth, seq_lengths))
    np.testing.assert_allclose(np.asarray(out_bf16), np.asarray(ref),
                               rtol=5e-2, atol=5e-2)

    print("KERNEL_OK")
</pallas_src>

<mosaic_0001>
module attributes {stable_mosaic.version = 11 : i64} {
  func.func @_bigru_chunk_kernel(%arg0: i32, %arg1: memref<8x1xi32, #tpu.memory_space<vmem>>, %arg2: memref<24x32xf32, #tpu.memory_space<vmem>>, %arg3: memref<24x32xf32, #tpu.memory_space<vmem>>, %arg4: memref<32x96xf32, #tpu.memory_space<vmem>>, %arg5: memref<1x96xf32, #tpu.memory_space<vmem>>, %arg6: memref<32x96xf32, #tpu.memory_space<vmem>>, %arg7: memref<1x96xf32, #tpu.memory_space<vmem>>, %arg8: memref<32x96xf32, #tpu.memory_space<vmem>>, %arg9: memref<1x96xf32, #tpu.memory_space<vmem>>, %arg10: memref<32x96xf32, #tpu.memory_space<vmem>>, %arg11: memref<1x96xf32, #tpu.memory_space<vmem>>, %arg12: memref<24x32xf32, #tpu.memory_space<vmem>>, %arg13: memref<24x32xf32, #tpu.memory_space<vmem>>, %arg14: memref<8x32xf32, #tpu.memory_space<vmem>>, %arg15: memref<8x32xf32, #tpu.memory_space<vmem>>, %arg16: memref<24x96xf32, #tpu.memory_space<vmem>>, %arg17: memref<24x96xf32, #tpu.memory_space<vmem>>) attributes {dimension_semantics = [#tpu.dimension_semantics<arbitrary>], iteration_bounds = array<i64: 3>, scalar_prefetch = 0 : i64, scratch_operands = 4 : i64, tpu.core_type = #tpu.core_type<tc>, window_params = [{pipeline_mode = #tpu.pipeline_mode<synchronous>, transform_indices = @transform_0, window_bounds = array<i64: 8, 1>}, {transform_indices = @transform_1, window_bounds = array<i64: 24, 32>}, {transform_indices = @transform_2, window_bounds = array<i64: 24, 32>}, {pipeline_mode = #tpu.pipeline_mode<synchronous>, transform_indices = @transform_3, window_bounds = array<i64: 32, 96>}, {pipeline_mode = #tpu.pipeline_mode<synchronous>, transform_indices = @transform_4, window_bounds = array<i64: 1, 96>}, {pipeline_mode = #tpu.pipeline_mode<synchronous>, transform_indices = @transform_5, window_bounds = array<i64: 32, 96>}, {pipeline_mode = #tpu.pipeline_mode<synchronous>, transform_indices = @transform_6, window_bounds = array<i64: 1, 96>}, {pipeline_mode = #tpu.pipeline_mode<synchronous>, transform_indices = @transform_7, window_bounds = array<i64: 32, 96>}, {pipeline_mode = #tpu.pipeline_mode<synchronous>, transform_indices = @transform_8, window_bounds = array<i64: 1, 96>}, {pipeline_mode = #tpu.pipeline_mode<synchronous>, transform_indices = @transform_9, window_bounds = array<i64: 32, 96>}, {pipeline_mode = #tpu.pipeline_mode<synchronous>, transform_indices = @transform_10, window_bounds = array<i64: 1, 96>}, {transform_indices = @transform_11, window_bounds = array<i64: 24, 32>}, {transform_indices = @transform_12, window_bounds = array<i64: 24, 32>}]} {
    %c0_i32 = arith.constant 0 : i32
    %0 = arith.cmpi eq, %arg0, %c0_i32 : i32
    %1 = arith.extui %0 : i1 to i32
    %c0_i32_0 = arith.constant 0 : i32
    %2 = arith.cmpi ne, %1, %c0_i32_0 : i32
    scf.if %2 {
      %cst_93 = arith.constant 0.000000e+00 : f32
      %304 = vector.broadcast %cst_93 : f32 to vector<8x32xf32>
      %c0_94 = arith.constant 0 : index
      %c0_95 = arith.constant 0 : index
      %305 = vector.load %arg14[%c0_94, %c0_95] : memref<8x32xf32, #tpu.memory_space<vmem>>, vector<8x32xf32>
      tpu.vector_store %arg14[%c0_94, %c0_95], %304 {strides = array<i32>} : memref<8x32xf32, #tpu.memory_space<vmem>>, vector<8x32xf32>,
      %cst_96 = arith.constant 0.000000e+00 : f32
      %306 = vector.broadcast %cst_96 : f32 to vector<8x32xf32>
      %c0_97 = arith.constant 0 : index
      %c0_98 = arith.constant 0 : index
      %307 = vector.load %arg15[%c0_97, %c0_98] : memref<8x32xf32, #tpu.memory_space<vmem>>, vector<8x32xf32>
      tpu.vector_store %arg15[%c0_97, %c0_98], %306 {strides = array<i32>} : memref<8x32xf32, #tpu.memory_space<vmem>>, vector<8x32xf32>,
    } else {
    }
    %c0 = arith.constant 0 : index
    %c0_1 = arith.constant 0 : index
    %3 = vector.load %arg2[%c0, %c0_1] : memref<24x32xf32, #tpu.memory_space<vmem>>, vector<24x32xf32>
    %c0_2 = arith.constant 0 : index
    %c0_3 = arith.constant 0 : index
    %4 = vector.load %arg4[%c0_2, %c0_3] : memref<32x96xf32, #tpu.memory_space<vmem>>, vector<32x96xf32>
    %cst = arith.constant dense<0.000000e+00> : vector<24x96xf32>
    %5 = tpu.matmul %3, %4, %cst {dimension_numbers = #tpu.dot_dimension_numbers<[1], [0], [0], [1], [0, 0, 1, 1], [], []>} : vector<24x32xf32>, vector<32x96xf32>, vector<24x96xf32> -> vector<24x96xf32>
    %c0_4 = arith.constant 0 : index
    %c0_5 = arith.constant 0 : index
    %6 = vector.load %arg5[%c0_4, %c0_5] : memref<1x96xf32, #tpu.memory_space<vmem>>, vector<1x96xf32>
    %7 = vector.broadcast %6 : vector<1x96xf32> to vector<24x96xf32>
    %8 = arith.addf %5, %7 : vector<24x96xf32>
    %c0_6 = arith.constant 0 : index
    %c0_7 = arith.constant 0 : index
    %9 = vector.load %arg16[%c0_6, %c0_7] : memref<24x96xf32, #tpu.memory_space<vmem>>, vector<24x96xf32>
    tpu.vector_store %arg16[%c0_6, %c0_7], %8 {strides = array<i32>} : memref<24x96xf32, #tpu.memory_space<vmem>>, vector<24x96xf32>,
    %c0_8 = arith.constant 0 : index
    %c0_9 = arith.constant 0 : index
    %10 = vector.load %arg3[%c0_8, %c0_9] : memref<24x32xf32, #tpu.memory_space<vmem>>, vector<24x32xf32>
    %c0_10 = arith.constant 0 : index
    %c0_11 = arith.constant 0 : index
    %11 = vector.load %arg6[%c0_10, %c0_11] : memref<32x96xf32, #tpu.memory_space<vmem>>, vector<32x96xf32>
    %cst_12 = arith.constant dense<0.000000e+00> : vector<24x96xf32>
    %12 = tpu.matmul %10, %11, %cst_12 {dimension_numbers = #tpu.dot_dimension_numbers<[1], [0], [0], [1], [0, 0, 1, 1], [], []>} : vector<24x32xf32>, vector<32x96xf32>, vector<24x96xf32> -> vector<24x96xf32>
    %c0_13 = arith.constant 0 : index
    %c0_14 = arith.constant 0 : index
    %13 = vector.load %arg7[%c0_13, %c0_14] : memref<1x96xf32, #tpu.memory_space<vmem>>, vector<1x96xf32>
    %14 = vector.broadcast %13 : vector<1x96xf32> to vector<24x96xf32>
    %15 = arith.addf %12, %14 : vector<24x96xf32>
    %c0_15 = arith.constant 0 : index
    %c0_16 = arith.constant 0 : index
    %16 = vector.load %arg17[%c0_15, %c0_16] : memref<24x96xf32, #tpu.memory_space<vmem>>, vector<24x96xf32>
    tpu.vector_store %arg17[%c0_15, %c0_16], %15 {strides = array<i32>} : memref<24x96xf32, #tpu.memory_space<vmem>>, vector<24x96xf32>,
    %c0_17 = arith.constant 0 : index
    %c0_18 = arith.constant 0 : index
    %17 = vector.load %arg1[%c0_17, %c0_18] : memref<8x1xi32, #tpu.memory_space<vmem>>, vector<8x1xi32>
    %c3_i32 = arith.constant 3 : i32
    %18 = arith.muli %arg0, %c3_i32 : i32
    %c2_i32 = arith.constant 2 : i32
    %19 = arith.subi %c2_i32, %arg0 : i32
    %c3_i32_19 = arith.constant 3 : i32
    %20 = arith.muli %19, %c3_i32_19 : i32
    %c0_20 = arith.constant 0 : index
    %c0_21 = arith.constant 0 : index
    %21 = vector.load %arg14[%c0_20, %c0_21] : memref<8x32xf32, #tpu.memory_space<vmem>>, vector<8x32xf32>
    %c0_22 = arith.constant 0 : index
    %c0_23 = arith.constant 0 : index
    %22 = vector.load %arg15[%c0_22, %c0_23] : memref<8x32xf32, #tpu.memory_space<vmem>>, vector<8x32xf32>
    %c0_i32_24 = arith.constant 0 : i32
    %c2_i32_25 = arith.constant 2 : i32
    %23 = arith.subi %c2_i32_25, %c0_i32_24 : i32
    %c8_i32 = arith.constant 8 : i32
    %24 = arith.muli %c0_i32_24, %c8_i32 : i32
    %25 = tpu.assume_multiple %24, 8 : i32
    %c8_i32_26 = arith.constant 8 : i32
    %26 = arith.muli %23, %c8_i32_26 : i32
    %27 = tpu.assume_multiple %26, 8 : i32
    %28 = arith.addi %18, %c0_i32_24 : i32
    %29 = vector.broadcast %28 : i32 to vector<8x1xi32>
    %30 = arith.cmpi sgt, %17, %29 : vector<8x1xi32>
    %31 = arith.extui %30 : vector<8x1xi1> to vector<8x1xi32>
    %32 = arith.sitofp %31 : vector<8x1xi32> to vector<8x1xf32>
    %33 = arith.addi %20, %23 : i32
    %34 = vector.broadcast %33 : i32 to vector<8x1xi32>
    %35 = arith.cmpi sgt, %17, %34 : vector<8x1xi32>
    %36 = arith.extui %35 : vector<8x1xi1> to vector<8x1xi32>
    %37 = arith.sitofp %36 : vector<8x1xi32> to vector<8x1xf32>
    %38 = arith.index_cast %25 : i32 to index
    %c0_27 = arith.constant 0 : index
    %39 = vector.load %arg16[%38, %c0_27] : memref<24x96xf32, #tpu.memory_space<vmem>>, vector<8x96xf32>
    %c0_28 = arith.constant 0 : index
    %c0_29 = arith.constant 0 : index
    %40 = vector.load %arg8[%c0_28, %c0_29] : memref<32x96xf32, #tpu.memory_space<vmem>>, vector<32x96xf32>
    %cst_30 = arith.constant dense<0.000000e+00> : vector<8x96xf32>
    %41 = tpu.matmul %21, %40, %cst_30 {dimension_numbers = #tpu.dot_dimension_numbers<[1], [0], [0], [1], [0, 0, 1, 1], [], []>} : vector<8x32xf32>, vector<32x96xf32>, vector<8x96xf32> -> vector<8x96xf32>
    %c0_31 = arith.constant 0 : index
    %c0_32 = arith.constant 0 : index
    %42 = vector.load %arg9[%c0_31, %c0_32] : memref<1x96xf32, #tpu.memory_space<vmem>>, vector<1x96xf32>
    %43 = vector.broadcast %42 : vector<1x96xf32> to vector<8x96xf32>
    %44 = arith.addf %41, %43 : vector<8x96xf32>
    %45 = vector.extract_strided_slice %39 {offsets = [0, 0], sizes = [8, 32], strides = [1, 1]} : vector<8x96xf32> to vector<8x32xf32>
    %46 = vector.extract_strided_slice %44 {offsets = [0, 0], sizes = [8, 32], strides = [1, 1]} : vector<8x96xf32> to vector<8x32xf32>
    %47 = arith.addf %45, %46 : vector<8x32xf32>
    %48 = arith.negf %47 : vector<8x32xf32>
    %49 = math.exp %48 : vector<8x32xf32>
    %cst_33 = arith.constant 1.000000e+00 : f32
    %50 = vector.broadcast %cst_33 : f32 to vector<8x32xf32>
    %51 = arith.addf %50, %49 : vector<8x32xf32>
    %52 = arith.divf %50, %51 : vector<8x32xf32>
    %53 = vector.extract_strided_slice %39 {offsets = [0, 32], sizes = [8, 32], strides = [1, 1]} : vector<8x96xf32> to vector<8x32xf32>
    %54 = vector.extract_strided_slice %44 {offsets = [0, 32], sizes = [8, 32], strides = [1, 1]} : vector<8x96xf32> to vector<8x32xf32>
    %55 = arith.addf %53, %54 : vector<8x32xf32>
    %56 = arith.negf %55 : vector<8x32xf32>
    %57 = math.exp %56 : vector<8x32xf32>
    %cst_34 = arith.constant 1.000000e+00 : f32
    %58 = vector.broadcast %cst_34 : f32 to vector<8x32xf32>
    %59 = arith.addf %58, %57 : vector<8x32xf32>
    %60 = arith.divf %58, %59 : vector<8x32xf32>
    %61 = vector.extract_strided_slice %39 {offsets = [0, 64], sizes = [8, 32], strides = [1, 1]} : vector<8x96xf32> to vector<8x32xf32>
    %62 = vector.extract_strided_slice %44 {offsets = [0, 64], sizes = [8, 32], strides = [1, 1]} : vector<8x96xf32> to vector<8x32xf32>
    %63 = arith.mulf %52, %62 : vector<8x32xf32>
    %64 = arith.addf %61, %63 : vector<8x32xf32>
    %65 = math.tanh %64 : vector<8x32xf32>
    %66 = arith.subf %21, %65 : vector<8x32xf32>
    %67 = arith.mulf %60, %66 : vector<8x32xf32>
    %68 = arith.addf %65, %67 : vector<8x32xf32>
    %69 = arith.index_cast %27 : i32 to index
    %c0_35 = arith.constant 0 : index
    %70 = vector.load %arg17[%69, %c0_35] : memref<24x96xf32, #tpu.memory_space<vmem>>, vector<8x96xf32>
    %c0_36 = arith.constant 0 : index
    %c0_37 = arith.constant 0 : index
    %71 = vector.load %arg10[%c0_36, %c0_37] : memref<32x96xf32, #tpu.memory_space<vmem>>, vector<32x96xf32>
    %cst_38 = arith.constant dense<0.000000e+00> : vector<8x96xf32>
    %72 = tpu.matmul %22, %71, %cst_38 {dimension_numbers = #tpu.dot_dimension_numbers<[1], [0], [0], [1], [0, 0, 1, 1], [], []>} : vector<8x32xf32>, vector<32x96xf32>, vector<8x96xf32> -> vector<8x96xf32>
    %c0_39 = arith.constant 0 : index
    %c0_40 = arith.constant 0 : index
    %73 = vector.load %arg11[%c0_39, %c0_40] : memref<1x96xf32, #tpu.memory_space<vmem>>, vector<1x96xf32>
    %74 = vector.broadcast %73 : vector<1x96xf32> to vector<8x96xf32>
    %75 = arith.addf %72, %74 : vector<8x96xf32>
    %76 = vector.extract_strided_slice %70 {offsets = [0, 0], sizes = [8, 32], strides = [1, 1]} : vector<8x96xf32> to vector<8x32xf32>
    %77 = vector.extract_strided_slice %75 {offsets = [0, 0], sizes = [8, 32], strides = [1, 1]} : vector<8x96xf32> to vector<8x32xf32>
    %78 = arith.addf %76, %77 : vector<8x32xf32>
    %79 = arith.negf %78 : vector<8x32xf32>
    %80 = math.exp %79 : vector<8x32xf32>
    %cst_41 = arith.constant 1.000000e+00 : f32
    %81 = vector.broadcast %cst_41 : f32 to vector<8x32xf32>
    %82 = arith.addf %81, %80 : vector<8x32xf32>
    %83 = arith.divf %81, %82 : vector<8x32xf32>
    %84 = vector.extract_strided_slice %70 {offsets = [0, 32], sizes = [8, 32], strides = [1, 1]} : vector<8x96xf32> to vector<8x32xf32>
    %85 = vector.extract_strided_slice %75 {offsets = [0, 32], sizes = [8, 32], strides = [1, 1]} : vector<8x96xf32> to vector<8x32xf32>
    %86 = arith.addf %84, %85 : vector<8x32xf32>
    %87 = arith.negf %86 : vector<8x32xf32>
    %88 = math.exp %87 : vector<8x32xf32>
    %cst_42 = arith.constant 1.000000e+00 : f32
    %89 = vector.broadcast %cst_42 : f32 to vector<8x32xf32>
    %90 = arith.addf %89, %88 : vector<8x32xf32>
    %91 = arith.divf %89, %90 : vector<8x32xf32>
    %92 = vector.extract_strided_slice %70 {offsets = [0, 64], sizes = [8, 32], strides = [1, 1]} : vector<8x96xf32> to vector<8x32xf32>
    %93 = vector.extract_strided_slice %75 {offsets = [0, 64], sizes = [8, 32], strides = [1, 1]} : vector<8x96xf32> to vector<8x32xf32>
    %94 = arith.mulf %83, %93 : vector<8x32xf32>
    %95 = arith.addf %92, %94 : vector<8x32xf32>
    %96 = math.tanh %95 : vector<8x32xf32>
    %97 = arith.subf %22, %96 : vector<8x32xf32>
    %98 = arith.mulf %91, %97 : vector<8x32xf32>
    %99 = arith.addf %96, %98 : vector<8x32xf32>
    %100 = arith.subf %68, %21 : vector<8x32xf32>
    %101 = vector.broadcast %32 : vector<8x1xf32> to vector<8x32xf32>
    %102 = arith.mulf %101, %100 : vector<8x32xf32>
    %103 = arith.addf %21, %102 : vector<8x32xf32>
    %104 = arith.subf %99, %22 : vector<8x32xf32>
    %105 = vector.broadcast %37 : vector<8x1xf32> to vector<8x32xf32>
    %106 = arith.mulf %105, %104 : vector<8x32xf32>
    %107 = arith.addf %22, %106 : vector<8x32xf32>
    %108 = vector.broadcast %32 : vector<8x1xf32> to vector<8x32xf32>
    %109 = arith.mulf %108, %103 : vector<8x32xf32>
    %110 = arith.index_cast %25 : i32 to index
    %c0_43 = arith.constant 0 : index
    %111 = vector.load %arg12[%110, %c0_43] : memref<24x32xf32, #tpu.memory_space<vmem>>, vector<8x32xf32>
    tpu.vector_store %arg12[%110, %c0_43], %109 {strides = array<i32>} : memref<24x32xf32, #tpu.memory_space<vmem>>, vector<8x32xf32>,
    %112 = vector.broadcast %37 : vector<8x1xf32> to vector<8x32xf32>
    %113 = arith.mulf %112, %107 : vector<8x32xf32>
    %114 = arith.index_cast %27 : i32 to index
    %c0_44 = arith.constant 0 : index
    %115 = vector.load %arg13[%114, %c0_44] : memref<24x32xf32, #tpu.memory_space<vmem>>, vector<8x32xf32>
    tpu.vector_store %arg13[%114, %c0_44], %113 {strides = array<i32>} : memref<24x32xf32, #tpu.memory_space<vmem>>, vector<8x32xf32>,
    %c1_i32 = arith.constant 1 : i32
    %c2_i32_45 = arith.constant 2 : i32
    %116 = arith.subi %c2_i32_45, %c1_i32 : i32
    %c8_i32_46 = arith.constant 8 : i32
    %117 = arith.muli %c1_i32, %c8_i32_46 : i32
    %118 = tpu.assume_multiple %117, 8 : i32
    %c8_i32_47 = arith.constant 8 : i32
    %119 = arith.muli %116, %c8_i32_47 : i32
    %120 = tpu.assume_multiple %119, 8 : i32
    %121 = arith.addi %18, %c1_i32 : i32
    %122 = vector.broadcast %121 : i32 to vector<8x1xi32>
    %123 = arith.cmpi sgt, %17, %122 : vector<8x1xi32>
    %124 = arith.extui %123 : vector<8x1xi1> to vector<8x1xi32>
    %125 = arith.sitofp %124 : vector<8x1xi32> to vector<8x1xf32>
    %126 = arith.addi %20, %116 : i32
    %127 = vector.broadcast %126 : i32 to vector<8x1xi32>
    %128 = arith.cmpi sgt, %17, %127 : vector<8x1xi32>
    %129 = arith.extui %128 : vector<8x1xi1> to vector<8x1xi32>
    %130 = arith.sitofp %129 : vector<8x1xi32> to vector<8x1xf32>
    %131 = arith.index_cast %118 : i32 to index
    %c0_48 = arith.constant 0 : index
    %132 = vector.load %arg16[%131, %c0_48] : memref<24x96xf32, #tpu.memory_space<vmem>>, vector<8x96xf32>
    %c0_49 = arith.constant 0 : index
    %c0_50 = arith.constant 0 : index
    %133 = vector.load %arg8[%c0_49, %c0_50] : memref<32x96xf32, #tpu.memory_space<vmem>>, vector<32x96xf32>
    %cst_51 = arith.constant dense<0.000000e+00> : vector<8x96xf32>
    %134 = tpu.matmul %103, %133, %cst_51 {dimension_numbers = #tpu.dot_dimension_numbers<[1], [0], [0], [1], [0, 0, 1, 1], [], []>} : vector<8x32xf32>, vector<32x96xf32>, vector<8x96xf32> -> vector<8x96xf32>
    %c0_52 = arith.constant 0 : index
    %c0_53 = arith.constant 0 : index
    %135 = vector.load %arg9[%c0_52, %c0_53] : memref<1x96xf32, #tpu.memory_space<vmem>>, vector<1x96xf32>
    %136 = vector.broadcast %135 : vector<1x96xf32> to vector<8x96xf32>
    %137 = arith.addf %134, %136 : vector<8x96xf32>
    %138 = vector.extract_strided_slice %132 {offsets = [0, 0], sizes = [8, 32], strides = [1, 1]} : vector<8x96xf32> to vector<8x32xf32>
    %139 = vector.extract_strided_slice %137 {offsets = [0, 0], sizes = [8, 32], strides = [1, 1]} : vector<8x96xf32> to vector<8x32xf32>
    %140 = arith.addf %138, %139 : vector<8x32xf32>
    %141 = arith.negf %140 : vector<8x32xf32>
    %142 = math.exp %141 : vector<8x32xf32>
    %cst_54 = arith.constant 1.000000e+00 : f32
    %143 = vector.broadcast %cst_54 : f32 to vector<8x32xf32>
    %144 = arith.addf %143, %142 : vector<8x32xf32>
    %145 = arith.divf %143, %144 : vector<8x32xf32>
    %146 = vector.extract_strided_slice %132 {offsets = [0, 32], sizes = [8, 32], strides = [1, 1]} : vector<8x96xf32> to vector<8x32xf32>
    %147 = vector.extract_strided_slice %137 {offsets = [0, 32], sizes = [8, 32], strides = [1, 1]} : vector<8x96xf32> to vector<8x32xf32>
    %148 = arith.addf %146, %147 : vector<8x32xf32>
    %149 = arith.negf %148 : vector<8x32xf32>
    %150 = math.exp %149 : vector<8x32xf32>
    %cst_55 = arith.constant 1.000000e+00 : f32
    %151 = vector.broadcast %cst_55 : f32 to vector<8x32xf32>
    %152 = arith.addf %151, %150 : vector<8x32xf32>
    %153 = arith.divf %151, %152 : vector<8x32xf32>
    %154 = vector.extract_strided_slice %132 {offsets = [0, 64], sizes = [8, 32], strides = [1, 1]} : vector<8x96xf32> to vector<8x32xf32>
    %155 = vector.extract_strided_slice %137 {offsets = [0, 64], sizes = [8, 32], strides = [1, 1]} : vector<8x96xf32> to vector<8x32xf32>
    %156 = arith.mulf %145, %155 : vector<8x32xf32>
    %157 = arith.addf %154, %156 : vector<8x32xf32>
    %158 = math.tanh %157 : vector<8x32xf32>
    %159 = arith.subf %103, %158 : vector<8x32xf32>
    %160 = arith.mulf %153, %159 : vector<8x32xf32>
    %161 = arith.addf %158, %160 : vector<8x32xf32>
    %162 = arith.index_cast %120 : i32 to index
    %c0_56 = arith.constant 0 : index
    %163 = vector.load %arg17[%162, %c0_56] : memref<24x96xf32, #tpu.memory_space<vmem>>, vector<8x96xf32>
    %c0_57 = arith.constant 0 : index
    %c0_58 = arith.constant 0 : index
    %164 = vector.load %arg10[%c0_57, %c0_58] : memref<32x96xf32, #tpu.memory_space<vmem>>, vector<32x96xf32>
    %cst_59 = arith.constant dense<0.000000e+00> : vector<8x96xf32>
    %165 = tpu.matmul %107, %164, %cst_59 {dimension_numbers = #tpu.dot_dimension_numbers<[1], [0], [0], [1], [0, 0, 1, 1], [], []>} : vector<8x32xf32>, vector<32x96xf32>, vector<8x96xf32> -> vector<8x96xf32>
    %c0_60 = arith.constant 0 : index
    %c0_61 = arith.constant 0 : index
    %166 = vector.load %arg11[%c0_60, %c0_61] : memref<1x96xf32, #tpu.memory_space<vmem>>, vector<1x96xf32>
    %167 = vector.broadcast %166 : vector<1x96xf32> to vector<8x96xf32>
    %168 = arith.addf %165, %167 : vector<8x96xf32>
    %169 = vector.extract_strided_slice %163 {offsets = [0, 0], sizes = [8, 32], strides = [1, 1]} : vector<8x96xf32> to vector<8x32xf32>
    %170 = vector.extract_strided_slice %168 {offsets = [0, 0], sizes = [8, 32], strides = [1, 1]} : vector<8x96xf32> to vector<8x32xf32>
    %171 = arith.addf %169, %170 : vector<8x32xf32>
    %172 = arith.negf %171 : vector<8x32xf32>
    %173 = math.exp %172 : vector<8x32xf32>
    %cst_62 = arith.constant 1.000000e+00 : f32
    %174 = vector.broadcast %cst_62 : f32 to vector<8x32xf32>
    %175 = arith.addf %174, %173 : vector<8x32xf32>
    %176 = arith.divf %174, %175 : vector<8x32xf32>
    %177 = vector.extract_strided_slice %163 {offsets = [0, 32], sizes = [8, 32], strides = [1, 1]} : vector<8x96xf32> to vector<8x32xf32>
    %178 = vector.extract_strided_slice %168 {offsets = [0, 32], sizes = [8, 32], strides = [1, 1]} : vector<8x96xf32> to vector<8x32xf32>
    %179 = arith.addf %177, %178 : vector<8x32xf32>
    %180 = arith.negf %179 : vector<8x32xf32>
    %181 = math.exp %180 : vector<8x32xf32>
    %cst_63 = arith.constant 1.000000e+00 : f32
    %182 = vector.broadcast %cst_63 : f32 to vector<8x32xf32>
    %183 = arith.addf %182, %181 : vector<8x32xf32>
    %184 = arith.divf %182, %183 : vector<8x32xf32>
    %185 = vector.extract_strided_slice %163 {offsets = [0, 64], sizes = [8, 32], strides = [1, 1]} : vector<8x96xf32> to vector<8x32xf32>
    %186 = vector.extract_strided_slice %168 {offsets = [0, 64], sizes = [8, 32], strides = [1, 1]} : vector<8x96xf32> to vector<8x32xf32>
    %187 = arith.mulf %176, %186 : vector<8x32xf32>
    %188 = arith.addf %185, %187 : vector<8x32xf32>
    %189 = math.tanh %188 : vector<8x32xf32>
    %190 = arith.subf %107, %189 : vector<8x32xf32>
    %191 = arith.mulf %184, %190 : vector<8x32xf32>
    %192 = arith.addf %189, %191 : vector<8x32xf32>
    %193 = arith.subf %161, %103 : vector<8x32xf32>
    %194 = vector.broadcast %125 : vector<8x1xf32> to vector<8x32xf32>
    %195 = arith.mulf %194, %193 : vector<8x32xf32>
    %196 = arith.addf %103, %195 : vector<8x32xf32>
    %197 = arith.subf %192, %107 : vector<8x32xf32>
    %198 = vector.broadcast %130 : vector<8x1xf32> to vector<8x32xf32>
    %199 = arith.mulf %198, %197 : vector<8x32xf32>
    %200 = arith.addf %107, %199 : vector<8x32xf32>
    %201 = vector.broadcast %125 : vector<8x1xf32> to vector<8x32xf32>
    %202 = arith.mulf %201, %196 : vector<8x32xf32>
    %203 = arith.index_cast %118 : i32 to index
    %c0_64 = arith.constant 0 : index
    %204 = vector.load %arg12[%203, %c0_64] : memref<24x32xf32, #tpu.memory_space<vmem>>, vector<8x32xf32>
    tpu.vector_store %arg12[%203, %c0_64], %202 {strides = array<i32>} : memref<24x32xf32, #tpu.memory_space<vmem>>, vector<8x32xf32>,
    %205 = vector.broadcast %130 : vector<8x1xf32> to vector<8x32xf32>
    %206 = arith.mulf %205, %200 : vector<8x32xf32>
    %207 = arith.index_cast %120 : i32 to index
    %c0_65 = arith.constant 0 : index
    %208 = vector.load %arg13[%207, %c0_65] : memref<24x32xf32, #tpu.memory_space<vmem>>, vector<8x32xf32>
    tpu.vector_store %arg13[%207, %c0_65], %206 {strides = array<i32>} : memref<24x32xf32, #tpu.memory_space<vmem>>, vector<8x32xf32>,
    %c2_i32_66 = arith.constant 2 : i32
    %c2_i32_67 = arith.constant 2 : i32
    %209 = arith.subi %c2_i32_67, %c2_i32_66 : i32
    %c8_i32_68 = arith.constant 8 : i32
    %210 = arith.muli %c2_i32_66, %c8_i32_68 : i32
    %211 = tpu.assume_multiple %210, 8 : i32
    %c8_i32_69 = arith.constant 8 : i32
    %212 = arith.muli %209, %c8_i32_69 : i32
    %213 = tpu.assume_multiple %212, 8 : i32
    %214 = arith.addi %18, %c2_i32_66 : i32
    %215 = vector.broadcast %214 : i32 to vector<8x1xi32>
    %216 = arith.cmpi sgt, %17, %215 : vector<8x1xi32>
    %217 = arith.extui %216 : vector<8x1xi1> to vector<8x1xi32>
    %218 = arith.sitofp %217 : vector<8x1xi32> to vector<8x1xf32>
    %219 = arith.addi %20, %209 : i32
    %220 = vector.broadcast %219 : i32 to vector<8x1xi32>
    %221 = arith.cmpi sgt, %17, %220 : vector<8x1xi32>
    %222 = arith.extui %221 : vector<8x1xi1> to vector<8x1xi32>
    %223 = arith.sitofp %222 : vector<8x1xi32> to vector<8x1xf32>
    %224 = arith.index_cast %211 : i32 to index
    %c0_70 = arith.constant 0 : index
    %225 = vector.load %arg16[%224, %c0_70] : memref<24x96xf32, #tpu.memory_space<vmem>>, vector<8x96xf32>
    %c0_71 = arith.constant 0 : index
    %c0_72 = arith.constant 0 : index
    %226 = vector.load %arg8[%c0_71, %c0_72] : memref<32x96xf32, #tpu.memory_space<vmem>>, vector<32x96xf32>
    %cst_73 = arith.constant dense<0.000000e+00> : vector<8x96xf32>
    %227 = tpu.matmul %196, %226, %cst_73 {dimension_numbers = #tpu.dot_dimension_numbers<[1], [0], [0], [1], [0, 0, 1, 1], [], []>} : vector<8x32xf32>, vector<32x96xf32>, vector<8x96xf32> -> vector<8x96xf32>
    %c0_74 = arith.constant 0 : index
    %c0_75 = arith.constant 0 : index
    %228 = vector.load %arg9[%c0_74, %c0_75] : memref<1x96xf32, #tpu.memory_space<vmem>>, vector<1x96xf32>
    %229 = vector.broadcast %228 : vector<1x96xf32> to vector<8x96xf32>
    %230 = arith.addf %227, %229 : vector<8x96xf32>
    %231 = vector.extract_strided_slice %225 {offsets = [0, 0], sizes = [8, 32], strides = [1, 1]} : vector<8x96xf32> to vector<8x32xf32>
    %232 = vector.extract_strided_slice %230 {offsets = [0, 0], sizes = [8, 32], strides = [1, 1]} : vector<8x96xf32> to vector<8x32xf32>
    %233 = arith.addf %231, %232 : vector<8x32xf32>
    %234 = arith.negf %233 : vector<8x32xf32>
    %235 = math.exp %234 : vector<8x32xf32>
    %cst_76 = arith.constant 1.000000e+00 : f32
    %236 = vector.broadcast %cst_76 : f32 to vector<8x32xf32>
    %237 = arith.addf %236, %235 : vector<8x32xf32>
    %238 = arith.divf %236, %237 : vector<8x32xf32>
    %239 = vector.extract_strided_slice %225 {offsets = [0, 32], sizes = [8, 32], strides = [1, 1]} : vector<8x96xf32> to vector<8x32xf32>
    %240 = vector.extract_strided_slice %230 {offsets = [0, 32], sizes = [8, 32], strides = [1, 1]} : vector<8x96xf32> to vector<8x32xf32>
    %241 = arith.addf %239, %240 : vector<8x32xf32>
    %242 = arith.negf %241 : vector<8x32xf32>
    %243 = math.exp %242 : vector<8x32xf32>
    %cst_77 = arith.constant 1.000000e+00 : f32
    %244 = vector.broadcast %cst_77 : f32 to vector<8x32xf32>
    %245 = arith.addf %244, %243 : vector<8x32xf32>
    %246 = arith.divf %244, %245 : vector<8x32xf32>
    %247 = vector.extract_strided_slice %225 {offsets = [0, 64], sizes = [8, 32], strides = [1, 1]} : vector<8x96xf32> to vector<8x32xf32>
    %248 = vector.extract_strided_slice %230 {offsets = [0, 64], sizes = [8, 32], strides = [1, 1]} : vector<8x96xf32> to vector<8x32xf32>
    %249 = arith.mulf %238, %248 : vector<8x32xf32>
    %250 = arith.addf %247, %249 : vector<8x32xf32>
    %251 = math.tanh %250 : vector<8x32xf32>
    %252 = arith.subf %196, %251 : vector<8x32xf32>
    %253 = arith.mulf %246, %252 : vector<8x32xf32>
    %254 = arith.addf %251, %253 : vector<8x32xf32>
    %255 = arith.index_cast %213 : i32 to index
    %c0_78 = arith.constant 0 : index
    %256 = vector.load %arg17[%255, %c0_78] : memref<24x96xf32, #tpu.memory_space<vmem>>, vector<8x96xf32>
    %c0_79 = arith.constant 0 : index
    %c0_80 = arith.constant 0 : index
    %257 = vector.load %arg10[%c0_79, %c0_80] : memref<32x96xf32, #tpu.memory_space<vmem>>, vector<32x96xf32>
    %cst_81 = arith.constant dense<0.000000e+00> : vector<8x96xf32>
    %258 = tpu.matmul %200, %257, %cst_81 {dimension_numbers = #tpu.dot_dimension_numbers<[1], [0], [0], [1], [0, 0, 1, 1], [], []>} : vector<8x32xf32>, vector<32x96xf32>, vector<8x96xf32> -> vector<8x96xf32>
    %c0_82 = arith.constant 0 : index
    %c0_83 = arith.constant 0 : index
    %259 = vector.load %arg11[%c0_82, %c0_83] : memref<1x96xf32, #tpu.memory_space<vmem>>, vector<1x96xf32>
    %260 = vector.broadcast %259 : vector<1x96xf32> to vector<8x96xf32>
    %261 = arith.addf %258, %260 : vector<8x96xf32>
    %262 = vector.extract_strided_slice %256 {offsets = [0, 0], sizes = [8, 32], strides = [1, 1]} : vector<8x96xf32> to vector<8x32xf32>
    %263 = vector.extract_strided_slice %261 {offsets = [0, 0], sizes = [8, 32], strides = [1, 1]} : vector<8x96xf32> to vector<8x32xf32>
    %264 = arith.addf %262, %263 : vector<8x32xf32>
    %265 = arith.negf %264 : vector<8x32xf32>
    %266 = math.exp %265 : vector<8x32xf32>
    %cst_84 = arith.constant 1.000000e+00 : f32
    %267 = vector.broadcast %cst_84 : f32 to vector<8x32xf32>
    %268 = arith.addf %267, %266 : vector<8x32xf32>
    %269 = arith.divf %267, %268 : vector<8x32xf32>
    %270 = vector.extract_strided_slice %256 {offsets = [0, 32], sizes = [8, 32], strides = [1, 1]} : vector<8x96xf32> to vector<8x32xf32>
    %271 = vector.extract_strided_slice %261 {offsets = [0, 32], sizes = [8, 32], strides = [1, 1]} : vector<8x96xf32> to vector<8x32xf32>
    %272 = arith.addf %270, %271 : vector<8x32xf32>
    %273 = arith.negf %272 : vector<8x32xf32>
    %274 = math.exp %273 : vector<8x32xf32>
    %cst_85 = arith.constant 1.000000e+00 : f32
    %275 = vector.broadcast %cst_85 : f32 to vector<8x32xf32>
    %276 = arith.addf %275, %274 : vector<8x32xf32>
    %277 = arith.divf %275, %276 : vector<8x32xf32>
    %278 = vector.extract_strided_slice %256 {offsets = [0, 64], sizes = [8, 32], strides = [1, 1]} : vector<8x96xf32> to vector<8x32xf32>
    %279 = vector.extract_strided_slice %261 {offsets = [0, 64], sizes = [8, 32], strides = [1, 1]} : vector<8x96xf32> to vector<8x32xf32>
    %280 = arith.mulf %269, %279 : vector<8x32xf32>
    %281 = arith.addf %278, %280 : vector<8x32xf32>
    %282 = math.tanh %281 : vector<8x32xf32>
    %283 = arith.subf %200, %282 : vector<8x32xf32>
    %284 = arith.mulf %277, %283 : vector<8x32xf32>
    %285 = arith.addf %282, %284 : vector<8x32xf32>
    %286 = arith.subf %254, %196 : vector<8x32xf32>
    %287 = vector.broadcast %218 : vector<8x1xf32> to vector<8x32xf32>
    %288 = arith.mulf %287, %286 : vector<8x32xf32>
    %289 = arith.addf %196, %288 : vector<8x32xf32>
    %290 = arith.subf %285, %200 : vector<8x32xf32>
    %291 = vector.broadcast %223 : vector<8x1xf32> to vector<8x32xf32>
    %292 = arith.mulf %291, %290 : vector<8x32xf32>
    %293 = arith.addf %200, %292 : vector<8x32xf32>
    %294 = vector.broadcast %218 : vector<8x1xf32> to vector<8x32xf32>
    %295 = arith.mulf %294, %289 : vector<8x32xf32>
    %296 = arith.index_cast %211 : i32 to index
    %c0_86 = arith.constant 0 : index
    %297 = vector.load %arg12[%296, %c0_86] : memref<24x32xf32, #tpu.memory_space<vmem>>, vector<8x32xf32>
    tpu.vector_store %arg12[%296, %c0_86], %295 {strides = array<i32>} : memref<24x32xf32, #tpu.memory_space<vmem>>, vector<8x32xf32>,
    %298 = vector.broadcast %223 : vector<8x1xf32> to vector<8x32xf32>
    %299 = arith.mulf %298, %293 : vector<8x32xf32>
    %300 = arith.index_cast %213 : i32 to index
    %c0_87 = arith.constant 0 : index
    %301 = vector.load %arg13[%300, %c0_87] : memref<24x32xf32, #tpu.memory_space<vmem>>, vector<8x32xf32>
    tpu.vector_store %arg13[%300, %c0_87], %299 {strides = array<i32>} : memref<24x32xf32, #tpu.memory_space<vmem>>, vector<8x32xf32>,
    %c3_i32_88 = arith.constant 3 : i32
    %c0_89 = arith.constant 0 : index
    %c0_90 = arith.constant 0 : index
    %302 = vector.load %arg14[%c0_89, %c0_90] : memref<8x32xf32, #tpu.memory_space<vmem>>, vector<8x32xf32>
    tpu.vector_store %arg14[%c0_89, %c0_90], %289 {strides = array<i32>} : memref<8x32xf32, #tpu.memory_space<vmem>>, vector<8x32xf32>,
    %c0_91 = arith.constant 0 : index
    %c0_92 = arith.constant 0 : index
    %303 = vector.load %arg15[%c0_91, %c0_92] : memref<8x32xf32, #tpu.memory_space<vmem>>, vector<8x32xf32>
    tpu.vector_store %arg15[%c0_91, %c0_92], %293 {strides = array<i32>} : memref<8x32xf32, #tpu.memory_space<vmem>>, vector<8x32xf32>,
    return
  }
  func.func @transform_0(%arg0: i32) -> (i32, i32) {
    %c0_i32 = arith.constant 0 : i32
    %c0_i32_0 = arith.constant 0 : i32
    %c0_i32_1 = arith.constant 0 : i32
    return %c0_i32, %c0_i32_0 : i32, i32
  }
  func.func @transform_1(%arg0: i32) -> (i32, i32) {
    %c0_i32 = arith.constant 0 : i32
    %c0_i32_0 = arith.constant 0 : i32
    return %arg0, %c0_i32 : i32, i32
  }
  func.func @transform_2(%arg0: i32) -> (i32, i32) {
    %c2_i32 = arith.constant 2 : i32
    %0 = arith.subi %c2_i32, %arg0 : i32
    %c0_i32 = arith.constant 0 : i32
    %c0_i32_0 = arith.constant 0 : i32
    return %0, %c0_i32 : i32, i32
  }
  func.func @transform_3(%arg0: i32) -> (i32, i32) {
    %c0_i32 = arith.constant 0 : i32
    %c0_i32_0 = arith.constant 0 : i32
    %c0_i32_1 = arith.constant 0 : i32
    return %c0_i32, %c0_i32_0 : i32, i32
  }
  func.func @transform_4(%arg0: i32) -> (i32, i32) {
    %c0_i32 = arith.constant 0 : i32
    %c0_i32_0 = arith.constant 0 : i32
    %c0_i32_1 = arith.constant 0 : i32
    return %c0_i32, %c0_i32_0 : i32, i32
  }
  func.func @transform_5(%arg0: i32) -> (i32, i32) {
    %c0_i32 = arith.constant 0 : i32
    %c0_i32_0 = arith.constant 0 : i32
    %c0_i32_1 = arith.constant 0 : i32
    return %c0_i32, %c0_i32_0 : i32, i32
  }
  func.func @transform_6(%arg0: i32) -> (i32, i32) {
    %c0_i32 = arith.constant 0 : i32
    %c0_i32_0 = arith.constant 0 : i32
    %c0_i32_1 = arith.constant 0 : i32
    return %c0_i32, %c0_i32_0 : i32, i32
  }
  func.func @transform_7(%arg0: i32) -> (i32, i32) {
    %c0_i32 = arith.constant 0 : i32
    %c0_i32_0 = arith.constant 0 : i32
    %c0_i32_1 = arith.constant 0 : i32
    return %c0_i32, %c0_i32_0 : i32, i32
  }
  func.func @transform_8(%arg0: i32) -> (i32, i32) {
    %c0_i32 = arith.constant 0 : i32
    %c0_i32_0 = arith.constant 0 : i32
    %c0_i32_1 = arith.constant 0 : i32
    return %c0_i32, %c0_i32_0 : i32, i32
  }
  func.func @transform_9(%arg0: i32) -> (i32, i32) {
    %c0_i32 = arith.constant 0 : i32
    %c0_i32_0 = arith.constant 0 : i32
    %c0_i32_1 = arith.constant 0 : i32
    return %c0_i32, %c0_i32_0 : i32, i32
  }
  func.func @transform_10(%arg0: i32) -> (i32, i32) {
    %c0_i32 = arith.constant 0 : i32
    %c0_i32_0 = arith.constant 0 : i32
    %c0_i32_1 = arith.constant 0 : i32
    return %c0_i32, %c0_i32_0 : i32, i32
  }
  func.func @transform_11(%arg0: i32) -> (i32, i32) {
    %c0_i32 = arith.constant 0 : i32
    %c0_i32_0 = arith.constant 0 : i32
    return %arg0, %c0_i32 : i32, i32
  }
  func.func @transform_12(%arg0: i32) -> (i32, i32) {
    %c2_i32 = arith.constant 2 : i32
    %0 = arith.subi %c2_i32, %arg0 : i32
    %c0_i32 = arith.constant 0 : i32
    %c0_i32_0 = arith.constant 0 : i32
    return %0, %c0_i32 : i32, i32
  }
}

</mosaic_0001>

<bundles_post_ra>
// kernel: _lambda_.1
= control target key start
LH: loop header
LB: loop body
LE: loop exit
PB: predicated region body
PF: predicated region fallthrough
CT: control target
= control target key end

     0   :  { %s1983_s21 = smov 0   ;;  %s2331_s0 = inlined_call_operand.vmem [shape: s32[8,1], index: 0, kind: input, shape index: {}]   ;;  %s2332_s1 = inlined_call_operand.vmem [shape: f32[72,32], index: 1, kind: input, shape index: {}, may-alias: {1,2}]   ;;  %s2333_s2 = inlined_call_operand.vmem [shape: f32[72,32], index: 2, kind: input, shape index: {}, may-alias: {1,2}]   ;;  %s2334_s3 = inlined_call_operand.vmem [shape: f32[32,96], index: 3, kind: input, shape index: {}]   ;;  %s2335_s4 = inlined_call_operand.vmem [shape: f32[1,96], index: 4, kind: input, shape index: {}]   ;;  %s2336_s5 = inlined_call_operand.vmem [shape: f32[32,96], index: 5, kind: input, shape index: {}]   ;;  %s2337_s6 = inlined_call_operand.vmem [shape: f32[1,96], index: 6, kind: input, shape index: {}]   ;;  %s2338_s7 = inlined_call_operand.vmem [shape: f32[32,96], index: 7, kind: input, shape index: {}]   ;;  %s2339_s8 = inlined_call_operand.vmem [shape: f32[1,96], index: 8, kind: input, shape index: {}]   ;;  %s2340_s9 = inlined_call_operand.vmem [shape: f32[32,96], index: 9, kind: input, shape index: {}]   ;;  %s2341_s10 = inlined_call_operand.vmem [shape: f32[1,96], index: 10, kind: input, shape index: {}]   ;;  %s2342_s11 = inlined_call_operand.vmem [shape: f32[72,32], index: 11, kind: output, shape index: {0}]   ;;  %s2343_s12 = inlined_call_operand.vmem [shape: f32[72,32], index: 12, kind: output, shape index: {1}]  }
   0x1 LB: > { %2345 = sst [smem:[#allocation6_spill]] %s1910_s21  ;;  %s1645_s22 = sadd.s32 4294967295, %s1910_s21   ;;  %s1910_s21 = sphi %s1983_s21, %s23_s21  }
   0x2   : > { %p1649_p0 = scmp.ge.s32.totalorder %s1910_s21, 1  ;;  %p383_p1 = scmp.lt.s32.totalorder %s1910_s21, 4 }
   0x4   : > { %p384_p2 = pnand %p1649_p0, %p383_p1 }
   0x5   : > { %s1991_s23 = smul.u32 (!%p384_p2), 3, %s1645_s22  ;;  %s443_s24 = ssub.s32 (!%p384_p2), 2, %s1645_s22 }
   0x6   : > { %387 = sbr.rel (%p384_p2) target bundleno = 2800 (0xaf0), region = 64  ;;  %p1654_p5 = scmp.ne.s32.totalorder (!%p384_p2), %s1645_s22, 0 }
   0x7   : > { %s1993_s25 = smul.u32 (!%p384_p2), 3, %s443_s24  ;;  %p438_p3 = scmp.lt.s32.totalorder (!%p384_p2), %s1991_s23, 8 }
   0x9   : > { %p445_p4 = scmp.lt.s32.totalorder (!%p384_p2), %s1993_s25, 8 }
   0xb   : > { %s439_s26 = scalar_select %p438_p3, %s1991_s23, 8 }
   0xc   : > { %s446_s27 = scalar_select %p445_p4, %s1993_s25, 8 }
   0xd   : > { %s1650_s28 = sshll.u32 %s439_s26, 3  ;;  %468 = sbr.rel (%p1654_p5) target bundleno = 20 (0x14), region = 68 }
   0xe   : > { %s2002_s13 = scalar_lea.vmem %s2332_s1, %s1650_s28  ;;  %s1651_s14 = sshll.u32 %s446_s27, 3 }
   0xf   : > { %s2007_s17 = scalar_lea.vmem %s2333_s2, %s1651_s14  ;;  %s2012_s20 = scalar_lea.vmem %s2342_s11, %s1650_s28 }
  0x10   : > { %s2017_s26 = scalar_lea.vmem %s2343_s12, %s1651_s14 }
  0x12   : > { %vm469_vm0 = vcmask 261120   ;;  %v1912_v0 = vmov 0.0  }
  0x13   : > { %470 = vst.msk [vmem:[#allocation2] sm:$0xff] %vm469_vm0, %v1912_v0  ;;  %471 = vst.msk [vmem:[#allocation3] sm:$0xff] %vm469_vm0, %v1912_v0 }
  0x14 PF: > { %v478_v1 = vld [vmem:[%s2334_s3 + $0x18] sm:$0xff]  ;;  %v1913_v3 = vmov 0.0   ;;  %v477_v4 = vld [vmem:[%s2334_s3 + $0x10] sm:$0xff]  ;;  %v476_v6 = vld [vmem:[%s2334_s3 + $0x8] sm:$0xff]  ;;  %vm486_vm1 = vcmask 261120   ;;  %vm1914_vm2 = vmmov 0  }
  0x15   : > { %v586_v2 = vld [vmem:[%s2336_s5 + $0x18] sm:$0xff]  ;;  %1737 = vmatprep.subr.mxu0 %v1913_v3  ;;  %1754 = vmatprep.subr.mxu1 %v1913_v3  ;;  %v585_v5 = vld [vmem:[%s2336_s5 + $0x10] sm:$0xff]  ;;  %v584_v7 = vld [vmem:[%s2336_s5 + $0x8] sm:$0xff]  ;;  %vm576_vm3 = vcmask 785408   ;;  %s1915_s30 = smov 64   ;;  %s696_s15 = sadd.s32 2, %s1993_s25 }
  0x16   : > { %1738 = vmatpush3.msra.mxu0 %v478_v1  ;;  %1755 = vmatpush3.msra.mxu1 %v586_v2  ;;  %v475_v8 = vld [vmem:[%s2334_s3] sm:$0xff]  ;;  %v2058_v12 = vld [vmem:[%s2338_s7 + $0x18] sm:$0xff]  ;;  %v473_v13 = vld [vmem:[%s2002_s13 + $0x8] sm:$0xff]  ;;  %s973_s22 = sadd.s32 1, %s1991_s23  ;;  %s978_s28 = sadd.s32 1, %s1993_s25 }
  0x17   : > { %1739 = vmatprep.subr.mxu0 %v1913_v3  ;;  %1756 = vmatprep.subr.mxu1 %v1913_v3  ;;  %v472_v9 = vld [vmem:[%s2002_s13] sm:$0xff]  ;;  %v2070_v14 = vld [vmem:[%s2338_s7 + $0x10] sm:$0xff]  ;;  %v581_v15 = vld [vmem:[%s2007_s17 + $0x8] sm:$0xff]  ;;  %s1257_s14 = sadd.s32 2, %s1991_s23 }
  0x18   : > { %1740 = vmatpush3.msra.mxu0 %v477_v4  ;;  %1757 = vmatpush3.msra.mxu1 %v585_v5  ;;  %v583_v10 = vld [vmem:[%s2336_s5] sm:$0xff]  ;;  %v2082_v16 = vld [vmem:[%s2340_s9 + $0x18] sm:$0xff]  ;;  %v2089_v17 = vld [vmem:[%s2338_s7 + $0x8] sm:$0xff] }
  0x19   : > { %1741 = vmatprep.subr.mxu0 %v1913_v3  ;;  %1758 = vmatprep.subr.mxu1 %v1913_v3  ;;  %v580_v11 = vld [vmem:[%s2007_s17] sm:$0xff]  ;;  %v474_v18 = vld [vmem:[%s2002_s13 + $0x10] sm:$0xff]  ;;  %v2118_v22 = vld [vmem:[%s2340_s9 + $0x8] sm:$0xff] }
  0x1a   : > { %1742 = vmatpush3.msra.mxu0 %v476_v6  ;;  %1759 = vmatpush3.msra.mxu1 %v584_v7  ;;  %v2100_v19 = vld [vmem:[%s2340_s9 + $0x10] sm:$0xff]  ;;  %v2108_v21 = vld [vmem:[%s2338_s7] sm:$0xff]  ;;  %v2135_v25 = vld [vmem:[#allocation3] sm:$0xff] }
  0x1b   : > { %1743 = vmatprep.subr.mxu0 %v1913_v3  ;;  %1745 = vmatprep.mubr.msk.f32.mxu0 %vm1914_vm2, %v1913_v3  ;;  %v582_v20 = vld [vmem:[%s2007_s17 + $0x10] sm:$0xff]  ;;  %v2120_v23 = vld [vmem:[#allocation2] sm:$0xff]  ;;  %s1917_s17 = smov 32  }
  0x1c   : > { %1744 = vmatpush3.msra.mxu0 %v475_v8  ;;  %1760 = vmatprep.subr.mxu1 %v1913_v3  ;;  %v2130_v24 = vld [vmem:[%s2340_s9] sm:$0xff] }
  0x1d   : > { %1746 = vmatmul.mubr.msk.f32.vlgmr.msra.gmra.mxu0 %vm486_vm1, %v472_v9  ;;  %1761 = vmatpush3.msra.mxu1 %v583_v10  ;;  %v1655_v26 = vld [vmem:[%s2335_s4] ss:$0 sm:$0xff] }
  0x1e   : > { %1762 = vmatprep.mubr.msk.f32.mxu1 %vm1914_vm2, %v1913_v3  ;;  %1771 = vmatprep.subr.mxu0 %v1913_v3  ;;  %v1659_v28 = vld [vmem:[%s2337_s6] ss:$0 sm:$0xff] }
  0x1f   : > { %1763 = vmatmul.mubr.msk.f32.vlgmr.msra.gmra.mxu1 %vm486_vm1, %v580_v11  ;;  %1772 = vmatpush3.msra.mxu0 %v2058_v12  ;;  %v2178_v44 = vld [vmem:[%s2339_s8] ss:$0 sm:$0xff]  ;;  %v1916_v11 = vmov 0  }
  0x20   : > { %1748 = vmatprep.mubr.msk.f32.mxu0 %vm1914_vm2, %v1913_v3  ;;  %1773 = vmatprep.subr.mxu0 %v1913_v3  ;;  %v2186_v49 = vld [vmem:[%s2341_s10] ss:$0 sm:$0xff] }
  0x21   : > { %1749 = vmatmul.mubr.msk.f32.gmra.mxu0 %vm486_vm1, %v473_v13  ;;  %1765 = vmatprep.mubr.msk.f32.mxu1 %vm1914_vm2, %v1913_v3 }
  0x22   : > { %1774 = vmatpush3.msra.mxu0 %v2070_v14  ;;  %1782 = vmatprep.subr.mxu1 %v1913_v3 }
  0x23   : > { %1766 = vmatmul.mubr.msk.f32.gmra.mxu1 %vm486_vm1, %v581_v15  ;;  %1775 = vmatprep.subr.mxu0 %v1913_v3 }
  0x24   : > { %1783 = vmatpush3.msra.mxu1 %v2082_v16  ;;  %1751 = vmatprep.mubr.msk.f32.mxu0 %vm1914_vm2, %v1913_v3 }
  0x25   : > { %1776 = vmatpush3.msra.mxu0 %v2089_v17  ;;  %1784 = vmatprep.subr.mxu1 %v1913_v3 }
  0x26   : > { %1752 = vmatmul.mubr.msk.f32.gmra.mxu0 %vm486_vm1, %v474_v18  ;;  %1768 = vmatprep.mubr.msk.f32.mxu1 %vm1914_vm2, %v1913_v3  ;;  %v2199_v18 = vld [vmem:[%s2331_s0] sm:$0xff] }
  0x27   : > { %1785 = vmatpush3.msra.mxu1 %v2100_v19  ;;  %1777 = vmatprep.subr.mxu0 %v1913_v3 }
  0x28   : > { %1769 = vmatmul.mubr.msk.f32.gmra.mxu1 %vm486_vm1, %v582_v20  ;;  %1778 = vmatpush3.msra.mxu0 %v2108_v21  ;;  %v692_v20 = vstv %s1991_s23 }
  0x29   : > { %1786 = vmatprep.subr.mxu1 %v1913_v3  ;;  %1779 = vmatprep.mubr.msk.f32.mxu0 %vm1914_vm2, %v1913_v3  ;;  %vm693_vm4 = vcmp.gt.s32.totalorder %v2199_v18, %v692_v20  ;;  %v974_v20 = vstv %s973_s22 }
  0x2a   : > { %1787 = vmatpush3.msra.mxu1 %v2118_v22  ;;  %1780 = vmatmul.mubr.msk.f32.vlgmr.msra.gmra.mxu0 %vm486_vm1, %v2120_v23  ;;  %vm975_vm6 = vcmp.gt.s32.totalorder %v2199_v18, %v974_v20 }
  0x2b   : > { %1788 = vmatprep.subr.mxu1 %v1913_v3  ;;  %1790 = vmatprep.mubr.msk.f32.mxu1 %vm1914_vm2, %v1913_v3 }
  0x2c   : > { %1789 = vmatpush3.msra.mxu1 %v2130_v24  ;;  %1793 = vmatprep.subr.mxu0 %v1913_v3 }
  0x2d   : > { %1791 = vmatmul.mubr.msk.f32.vlgmr.msra.gmra.mxu1 %vm486_vm1, %v2135_v25  ;;  %1794 = vmatpush3.msra.mxu0 %v2058_v12 }
  0x2e   : > { %1795 = vmatprep.subr.mxu0 %v1913_v3  ;;  %1804 = vmatprep.subr.mxu1 %v1913_v3 }
  0x2f   : > { %1796 = vmatpush3.msra.mxu0 %v2070_v14  ;;  %1801 = vmatprep.mubr.msk.f32.mxu0 %vm1914_vm2, %v1913_v3 }
  0x30   : > { %1797 = vmatprep.subr.mxu0 %v1913_v3  ;;  %1805 = vmatpush3.msra.mxu1 %v2082_v16 }
  0x31   : > { %1798 = vmatpush3.msra.mxu0 %v2089_v17  ;;  %1806 = vmatprep.subr.mxu1 %v1913_v3 }
  0x32   : > { %1799 = vmatprep.subr.mxu0 %v1913_v3  ;;  %1807 = vmatpush3.msra.mxu1 %v2100_v19 }
  0x33   : > { %1800 = vmatpush3.msra.mxu0 %v2108_v21  ;;  %1808 = vmatprep.subr.mxu1 %v1913_v3 }
  0x34   : > { %1809 = vmatpush3.msra.mxu1 %v2118_v22  ;;  %1812 = vmatprep.mubr.msk.f32.mxu1 %vm1914_vm2, %v1913_v3 }
  0x35   : > { %1810 = vmatprep.subr.mxu1 %v1913_v3  ;;  %1815 = vmatprep.subr.mxu0 %v1913_v3 }
  0x36   : > { %1811 = vmatpush3.msra.mxu1 %v2130_v24  ;;  %1851 = vset.pattern.permute.xlu0 %v1916_v11 }
  0x37   : > { %1826 = vmatprep.subr.mxu1 %v1913_v3  ;;  %1862 = vset.pattern.permute.xlu1 %v1916_v11 }
  0xdd   : > { %v562_v27 = vpop.f32.mrf.mxu0 }
  0xde   : > { %v563_v29 = vadd.f32 %v1655_v26, %v562_v27 }
  0xdf   : > { %v669_v30 = vpop.f32.mrf.mxu1  ;;  %v1747_v31 = vpop.f32.mrf.mxu0 }
  0xe0   : > { %577 = vst.msk [vmem:[#allocation4] sm:$0xff] %vm576_vm3, %v563_v29  ;;  %v670_v32 = vadd.f32 %v1659_v28, %v669_v30 }
  0xe1   : > { %v1764_v33 = vpop.f32.mrf.mxu1  ;;  %v567_v34 = vpop.f32.mrf.mxu0 }
  0xe2   : > { %683 = vst.msk [vmem:[#allocation5] sm:$0xff] %vm576_vm3, %v670_v32  ;;  %v568_v35 = vadd.f32 %v1655_v26, %v567_v34 }
  0xe3   : > { %v674_v36 = vpop.f32.mrf.mxu1  ;;  %v1750_v37 = vpop.f32.mrf.mxu0 }
  0xe4   : > { %578 = vst.msk [vmem:[#allocation4 + $0x8] sm:$0xff] %vm576_vm3, %v568_v35  ;;  %v675_v38 = vadd.f32 %v1659_v28, %v674_v36 }
  0xe5   : > { %v1767_v39 = vpop.f32.mrf.mxu1 }
  0xe6   : > { %684 = vst.msk [vmem:[#allocation5 + $0x8] sm:$0xff] %vm576_vm3, %v675_v38  ;;  %v572_v40 = vpop.f32.mrf.mxu0 }
  0xe7   : > { %v573_v41 = vadd.f32 %v1655_v26, %v572_v40  ;;  %v701_v54 = vld [vmem:[#allocation4] sm:$0xff]  ;;  %v697_v26 = vstv %s696_s15 }
  0xe8   : > { %v679_v42 = vpop.f32.mrf.mxu1  ;;  %v1753_v43 = vpop.f32.mrf.mxu0  ;;  %vm698_vm5 = vcmp.gt.s32.totalorder %v2199_v18, %v697_v26  ;;  %v979_v26 = vstv %s978_s28 }
  0xe9   : > { %579 = vst.msk [vmem:[#allocation4 + $0x10] sm:$0xff] %vm576_vm3, %v573_v41  ;;  %v680_v45 = vadd.f32 %v1659_v28, %v679_v42  ;;  %v1663_v28 = vsel %vm693_vm4, 1.0, %v1913_v3  ;;  %v1664_v29 = vsel %vm698_vm5, 1.0, %v1913_v3  ;;  %vm980_vm7 = vcmp.gt.s32.totalorder %v2199_v18, %v979_v26 }
  0xea   : > { %v782_v46 = vpop.f32.mrf.mxu0  ;;  %v1770_v47 = vpop.f32.mrf.mxu1  ;;  %v1852_v31 = vpack.i.bf16 %v1664_v29, %v1663_v28  ;;  %v1672_v28 = vsel %vm975_vm6, 1.0, %v1913_v3  ;;  %v1673_v29 = vsel %vm980_vm7, 1.0, %v1913_v3 }
  0xeb   : > { %685 = vst.msk [vmem:[#allocation5 + $0x10] sm:$0xff] %vm576_vm3, %v680_v45  ;;  %v783_v48 = vadd.f32 %v2178_v44, %v782_v46 }
  0xec   : > { %v1781_v50 = vpop.f32.mrf.mxu0 }
  0xed   : > { %v901_v51 = vpop.f32.mrf.mxu1  ;;  %794 = vrot.lane.b32.xlu0 %v783_v48, %s1915_s30  ;;  %v786_v55 = vadd.f32 %v783_v48, %v701_v54 }
  0xee   : > { %v902_v52 = vadd.f32 %v2186_v49, %v901_v51 }
  0xef   : > { %v1792_v53 = vpop.f32.mrf.mxu1  ;;  %v1667_v57 = vmul.f32 -1.442695, %v786_v55 }
  0xf1   : > { %913 = vrot.lane.b32.xlu0 %v902_v52, %s1915_s30  ;;  %1868 = vpow2.f32 %v1667_v57 }
  0xf2   : > { %v820_v56 = vld [vmem:[#allocation5 + $0x10] sm:$0xff] }
  0xf3   : > { %v905_v58 = vadd.f32 %v902_v52, %v820_v56 }
  0xf5   : > { %v1670_v59 = vmul.f32 -1.442695, %v905_v58 }
  0xf7   : > { %1870 = vpow2.f32 %v1670_v59 }
  0xfe   : > { %v1869_v60 = vpop.eup %1868 }
  0xff   : > { %v790_v61 = vadd.f32 1.0, %v1869_v60 }
 0x101   : > { %1872 = vrcp.f32 %v790_v61 }
 0x104   : > { %v1871_v62 = vpop.eup %1870 }
 0x105   : > { %v909_v63 = vadd.f32 1.0, %v1871_v62 }
 0x107   : > { %1874 = vrcp.f32 %v909_v63 }
 0x10e   : > { %v1873_v0 = vpop.eup %1872 }
 0x114   : > { %v1875_v4 = vpop.eup %1874 }
 0x15f   : > { %v795_v1 = vpop.permute.xlu0 %794 }
 0x160   : > { %v797_v2 = vmul.f32 %v1873_v0, %v795_v1 }
 0x162   : > { %799 = vrot.lane.b32.xlu1 %v797_v2, %s1915_s30 }
 0x163   : > { %v914_v5 = vpop.permute.xlu0 %913 }
 0x164   : > { %v916_v6 = vmul.f32 %v1875_v4, %v914_v5 }
 0x166   : > { %918 = vrot.lane.b32.xlu1 %v916_v6, %s1915_s30 }
 0x1d4   : > { %v800_v7 = vpop.permute.xlu1 %799 }
 0x1d5   : > { %v802_v8 = vadd.f32 %v800_v7, %v701_v54 }
 0x1d7   : > { %1876 = vtanh.f32 %v802_v8 }
 0x1d8   : > { %v919_v9 = vpop.permute.xlu1 %918 }
 0x1d9   : > { %v921_v10 = vadd.f32 %v919_v9, %v820_v56 }
 0x1db   : > { %1878 = vtanh.f32 %v921_v10 }
 0x1e4   : > { %v1877_v13 = vpop.eup %1876 }
 0x1e5   : > { %805 = vrot.lane.b32.xlu0 %v1877_v13, %s1915_s30 }
 0x1e8   : > { %v1879_v15 = vpop.eup %1878 }
 0x1e9   : > { %924 = vrot.lane.b32.xlu1 %v1879_v15, %s1915_s30 }
 0x257   : > { %v806_v27 = vpop.permute.xlu0 %805 }
 0x258   : > { %v808_v30 = vsub.f32 %v2120_v23, %v806_v27 }
 0x25a   : > { %810 = vrot.lane.b32.xlu0 %v808_v30, %s1917_s17 }
 0x25b   : > { %v925_v32 = vpop.permute.xlu1 %924 }
 0x25c   : > { %v927_v33 = vsub.f32 %v2135_v25, %v925_v32 }
 0x25e   : > { %929 = vrot.lane.b32.xlu1 %v927_v33, %s1917_s17  ;;  %1853 = vperm.xlu0 %1851, %v1852_v31   ;;  %v1857_v31 = vpack.i.bf16 %v1673_v29, %v1672_v28 }
 0x262   : > { %938 = vrot.lane.b32.xlu0 %v2120_v23, %s1915_s30 }
 0x2cc   : > { %v811_v34 = vpop.permute.xlu0 %810 }
 0x2cd   : > { %v813_v35 = vmul.f32 %v1873_v0, %v811_v34 }
 0x2cf   : > { %815 = vrot.lane.b32.xlu1 %v813_v35, %s1917_s17 }
 0x2d0   : > { %v930_v36 = vpop.permute.xlu1 %929 }
 0x2d1   : > { %v932_v37 = vmul.f32 %v1875_v4, %v930_v36 }
 0x2d3   : > { %934 = vrot.lane.b32.xlu1 %v932_v37, %s1917_s17 }
 0x2d7   : > { %953 = vrot.lane.b32.xlu1 %v2135_v25, %s1915_s30 }
 0x2d9   : > { %v1854_v38 = vpop.permute.xlu0 %1853 }
 0x2da   : > { %v1855_v41 = vunpack.i.l.bf16 %v1854_v38  ;;  %v1856_v50 = vunpack.i.h.bf16 %v1854_v38 }
 0x2dd   : > { %v939_v40 = vpop.permute.xlu0 %938 }
 0x341   : > { %v816_v39 = vpop.permute.xlu1 %815 }
 0x342   : > { %v818_v42 = vadd.f32 %v1877_v13, %v816_v39 }
 0x344   : > { %v941_v43 = vsub.f32 %v818_v42, %v939_v40 }
 0x345   : > { %v935_v45 = vpop.permute.xlu1 %934 }
 0x346   : > { %v947_v46 = vmul.f32 %v1855_v41, %v941_v43  ;;  %v937_v47 = vadd.f32 %v1879_v15, %v935_v45 }
 0x348   : > { %949 = vrot.lane.b32.xlu0 %v947_v46, %s1915_s30 }
 0x349   : > { %v954_v48 = vpop.permute.xlu1 %953 }
 0x34a   : > { %v956_v51 = vsub.f32 %v937_v47, %v954_v48 }
 0x34c   : > { %v962_v52 = vmul.f32 %v1856_v50, %v956_v51 }
 0x34e   : > { %964 = vrot.lane.b32.xlu1 %v962_v52, %s1915_s30 }
 0x3ba   : > { %v950_v53 = vpop.permute.xlu0 %949 }
 0x3bb   : > { %v2219_v54 = vadd.f32 %v950_v53, %v2120_v23 }
 0x3bd   : > { %v968_v55 = vmul.f32 %v1855_v41, %v2219_v54  ;;  %1802 = vmatmul.mubr.msk.f32.vlgmr.msra.gmra.mxu0 %vm486_vm1, %v2219_v54 }
 0x3be   : > { %1816 = vmatpush3.msra.mxu0 %v2058_v12  ;;  %1823 = vmatprep.mubr.msk.f32.mxu0 %vm1914_vm2, %v1913_v3 }
 0x3bf   : > { %969 = vst.msk [vmem:[%s2012_s20] sm:$0xff] %vm486_vm1, %v968_v55  ;;  %1817 = vmatprep.subr.mxu0 %v1913_v3 }
 0x3c0   : > { %v965_v56 = vpop.permute.xlu1 %964  ;;  %1818 = vmatpush3.msra.mxu0 %v2070_v14 }
 0x3c1   : > { %v2232_v23 = vadd.f32 %v965_v56, %v2135_v25  ;;  %1819 = vmatprep.subr.mxu0 %v1913_v3 }
 0x3c2   : > { %1820 = vmatpush3.msra.mxu0 %v2089_v17 }
 0x3c3   : > { %v970_v57 = vmul.f32 %v1856_v50, %v2232_v23  ;;  %1813 = vmatmul.mubr.msk.f32.vlgmr.msra.gmra.mxu1 %vm486_vm1, %v2232_v23  ;;  %1821 = vmatprep.subr.mxu0 %v1913_v3 }
 0x3c4   : > { %1822 = vmatpush3.msra.mxu0 %v2108_v21  ;;  %1827 = vmatpush3.msra.mxu1 %v2082_v16 }
 0x3c5   : > { %1671 = vst.msk [vmem:[%s2017_s26 + $0x10] sm:$0xff] %vm486_vm1, %v970_v57  ;;  %1828 = vmatprep.subr.mxu1 %v1913_v3  ;;  %1834 = vmatprep.mubr.msk.f32.mxu1 %vm1914_vm2, %v1913_v3 }
 0x3c6   : > { %1829 = vmatpush3.msra.mxu1 %v2100_v19  ;;  %v984_v19 = vld [vmem:[#allocation4 + $0x8] sm:$0xff] }
 0x3c7   : > { %1830 = vmatprep.subr.mxu1 %v1913_v3 }
 0x3c8   : > { %1831 = vmatpush3.msra.mxu1 %v2118_v22  ;;  %v1103_v22 = vld [vmem:[#allocation5 + $0x8] sm:$0xff] }
 0x3c9   : > { %1832 = vmatprep.subr.mxu1 %v1913_v3 }
 0x3ca   : > { %1833 = vmatpush3.msra.mxu1 %v2130_v24 }
 0x47d   : > { %v1065_v12 = vpop.f32.mrf.mxu0 }
 0x47e   : > { %v1066_v14 = vadd.f32 %v2178_v44, %v1065_v12 }
 0x47f   : > { %v1803_v16 = vpop.f32.mrf.mxu0 }
 0x480   : > { %1077 = vrot.lane.b32.xlu0 %v1066_v14, %s1915_s30  ;;  %v1069_v58 = vadd.f32 %v1066_v14, %v984_v19 }
 0x482   : > { %v1676_v59 = vmul.f32 -1.442695, %v1069_v58 }
 0x483   : > { %v1184_v17 = vpop.f32.mrf.mxu1 }
 0x484   : > { %v1185_v21 = vadd.f32 %v2186_v49, %v1184_v17  ;;  %1880 = vpow2.f32 %v1676_v59 }
 0x485   : > { %v1814_v25 = vpop.f32.mrf.mxu1 }
 0x486   : > { %1196 = vrot.lane.b32.xlu1 %v1185_v21, %s1915_s30  ;;  %v1188_v60 = vadd.f32 %v1185_v21, %v1103_v22 }
 0x488   : > { %v1679_v61 = vmul.f32 -1.442695, %v1188_v60 }
 0x48a   : > { %1882 = vpow2.f32 %v1679_v61 }
 0x491   : > { %v1881_v24 = vpop.eup %1880 }
 0x492   : > { %v1073_v62 = vadd.f32 1.0, %v1881_v24 }
 0x494   : > { %1884 = vrcp.f32 %v1073_v62 }
 0x497   : > { %v1883_v63 = vpop.eup %1882 }
 0x498   : > { %v1192_v0 = vadd.f32 1.0, %v1883_v63 }
 0x49a   : > { %1886 = vrcp.f32 %v1192_v0 }
 0x4a1   : > { %v1885_v1 = vpop.eup %1884 }
 0x4a7   : > { %v1887_v5 = vpop.eup %1886 }
 0x4f2   : > { %v1078_v2 = vpop.permute.xlu0 %1077 }
 0x4f3   : > { %v1080_v4 = vmul.f32 %v1885_v1, %v1078_v2 }
 0x4f5   : > { %1082 = vrot.lane.b32.xlu0 %v1080_v4, %s1915_s30 }
 0x4f8   : > { %v1197_v6 = vpop.permute.xlu1 %1196 }
 0x4f9   : > { %v1199_v7 = vmul.f32 %v1887_v5, %v1197_v6 }
 0x4fb   : > { %1201 = vrot.lane.b32.xlu1 %v1199_v7, %s1915_s30 }
 0x567   : > { %v1083_v8 = vpop.permute.xlu0 %1082 }
 0x568   : > { %v1085_v9 = vadd.f32 %v1083_v8, %v984_v19 }
 0x56a   : > { %1888 = vtanh.f32 %v1085_v9 }
 0x56d   : > { %v1202_v10 = vpop.permute.xlu1 %1201 }
 0x56e   : > { %v1204_v11 = vadd.f32 %v1202_v10, %v1103_v22  ;;  %v1385_v22 = vld [vmem:[#allocation5] sm:$0xff] }
 0x570   : > { %1890 = vtanh.f32 %v1204_v11 }
 0x577   : > { %v1889_v13 = vpop.eup %1888 }
 0x578   : > { %1088 = vrot.lane.b32.xlu0 %v1889_v13, %s1915_s30 }
 0x57d   : > { %v1891_v15 = vpop.eup %1890 }
 0x57e   : > { %1207 = vrot.lane.b32.xlu1 %v1891_v15, %s1915_s30 }
 0x5ea   : > { %v1089_v27 = vpop.permute.xlu0 %1088 }
 0x5eb   : > { %v1091_v30 = vsub.f32 %v2219_v54, %v1089_v27 }
 0x5ed   : > { %1093 = vrot.lane.b32.xlu0 %v1091_v30, %s1917_s17 }
 0x5f0   : > { %v1208_v32 = vpop.permute.xlu1 %1207 }
 0x5f1   : > { %v1210_v33 = vsub.f32 %v2232_v23, %v1208_v32  ;;  %1858 = vperm.xlu0 %1851, %v1857_v31  }
 0x5f3   : > { %1212 = vrot.lane.b32.xlu1 %v1210_v33, %s1917_s17 }
 0x65f   : > { %v1094_v34 = vpop.permute.xlu0 %1093 }
 0x660   : > { %v1096_v35 = vmul.f32 %v1885_v1, %v1094_v34 }
 0x662   : > { %1098 = vrot.lane.b32.xlu1 %v1096_v35, %s1917_s17 }
 0x665   : > { %v1213_v36 = vpop.permute.xlu1 %1212 }
 0x666   : > { %v1215_v37 = vmul.f32 %v1887_v5, %v1213_v36  ;;  %1221 = vrot.lane.b32.xlu1 %v2219_v54, %s1915_s30 }
 0x668   : > { %1217 = vrot.lane.b32.xlu0 %v1215_v37, %s1917_s17 }
 0x66c   : > { %1236 = vrot.lane.b32.xlu0 %v2232_v23, %s1915_s30  ;;  %v1859_v39 = vpop.permute.xlu0 %1858 }
 0x66d   : > { %v1860_v42 = vunpack.i.l.bf16 %v1859_v39  ;;  %v1861_v50 = vunpack.i.h.bf16 %v1859_v39 }
 0x6d4   : > { %v1099_v38 = vpop.permute.xlu1 %1098 }
 0x6d5   : > { %v1101_v40 = vadd.f32 %v1889_v13, %v1099_v38  ;;  %v1258_v13 = vstv %s1257_s14 }
 0x6d6   : > { %vm1259_vm8 = vcmp.gt.s32.totalorder %v2199_v18, %v1258_v13 }
 0x6d7   : > { %v1682_v26 = vsel %vm1259_vm8, 1.0, %v1913_v3 }
 0x6d8   : > { %v1222_v41 = vpop.permute.xlu1 %1221 }
 0x6d9   : > { %v1224_v43 = vsub.f32 %v1101_v40, %v1222_v41 }
 0x6da   : > { %v1218_v45 = vpop.permute.xlu0 %1217 }
 0x6db   : > { %v1230_v46 = vmul.f32 %v1860_v42, %v1224_v43  ;;  %v1220_v47 = vadd.f32 %v1891_v15, %v1218_v45  ;;  %v1262_v15 = vstv %s1993_s25 }
 0x6dc   : > { %vm1263_vm9 = vcmp.gt.s32.totalorder %v2199_v18, %v1262_v15 }
 0x6dd   : > { %1232 = vrot.lane.b32.xlu1 %v1230_v46, %s1915_s30  ;;  %v1683_v27 = vsel %vm1263_vm9, 1.0, %v1913_v3 }
 0x6de   : > { %v1237_v48 = vpop.permute.xlu0 %1236  ;;  %v1863_v29 = vpack.i.bf16 %v1683_v27, %v1682_v26 }
 0x6df   : > { %v1239_v51 = vsub.f32 %v1220_v47, %v1237_v48 }
 0x6e1   : > { %v1245_v52 = vmul.f32 %v1861_v50, %v1239_v51 }
 0x6e3   : > { %1247 = vrot.lane.b32.xlu0 %v1245_v52, %s1915_s30 }
 0x74f   : > { %v1233_v53 = vpop.permute.xlu1 %1232 }
 0x750   : > { %v2279_v55 = vadd.f32 %v1233_v53, %v2219_v54 }
 0x752   : > { %v1251_v56 = vmul.f32 %v1860_v42, %v2279_v55  ;;  %1824 = vmatmul.mubr.msk.f32.vlgmr.msra.gmra.mxu0 %vm486_vm1, %v2279_v55 }
 0x754   : > { %1680 = vst.msk [vmem:[%s2012_s20 + $0x8] sm:$0xff] %vm486_vm1, %v1251_v56 }
 0x755   : > { %v1248_v57 = vpop.permute.xlu0 %1247 }
 0x756   : > { %v2287_v12 = vadd.f32 %v1248_v57, %v2232_v23  ;;  %v1267_v23 = vld [vmem:[#allocation4 + $0x10] sm:$0xff] }
 0x758   : > { %v1254_v14 = vmul.f32 %v1861_v50, %v2287_v12  ;;  %1835 = vmatmul.mubr.msk.f32.vlgmr.msra.gmra.mxu1 %vm486_vm1, %v2287_v12 }
 0x75a   : > { %1681 = vst.msk [vmem:[%s2017_s26 + $0x8] sm:$0xff] %vm486_vm1, %v1254_v14 }
 0x812   : > { %v1348_v54 = vpop.f32.mrf.mxu0 }
 0x813   : > { %v1349_v16 = vadd.f32 %v2178_v44, %v1348_v54 }
 0x814   : > { %v1825_v17 = vpop.f32.mrf.mxu0 }
 0x815   : > { %1360 = vrot.lane.b32.xlu1 %v1349_v16, %s1915_s30  ;;  %v1352_v58 = vadd.f32 %v1349_v16, %v1267_v23 }
 0x817   : > { %v1686_v59 = vmul.f32 -1.442695, %v1352_v58 }
 0x818   : > { %v1466_v21 = vpop.f32.mrf.mxu1 }
 0x819   : > { %v1467_v25 = vadd.f32 %v2186_v49, %v1466_v21  ;;  %1892 = vpow2.f32 %v1686_v59 }
 0x81a   : > { %v1836_v19 = vpop.f32.mrf.mxu1 }
 0x81b   : > { %1478 = vrot.lane.b32.xlu0 %v1467_v25, %s1915_s30  ;;  %v1470_v60 = vadd.f32 %v1467_v25, %v1385_v22 }
 0x81d   : > { %v1689_v61 = vmul.f32 -1.442695, %v1470_v60 }
 0x81f   : > { %1894 = vpow2.f32 %v1689_v61 }
 0x826   : > { %v1893_v24 = vpop.eup %1892 }
 0x827   : > { %v1356_v62 = vadd.f32 1.0, %v1893_v24 }
 0x829   : > { %1896 = vrcp.f32 %v1356_v62 }
 0x82c   : > { %v1895_v44 = vpop.eup %1894 }
 0x82d   : > { %v1474_v63 = vadd.f32 1.0, %v1895_v44 }
 0x82f   : > { %1898 = vrcp.f32 %v1474_v63 }
 0x836   : > { %v1897_v0 = vpop.eup %1896 }
 0x83c   : > { %v1899_v2 = vpop.eup %1898 }
 0x887   : > { %v1361_v1 = vpop.permute.xlu1 %1360 }
 0x888   : > { %v1363_v49 = vmul.f32 %v1897_v0, %v1361_v1 }
 0x88a   : > { %1365 = vrot.lane.b32.xlu1 %v1363_v49, %s1915_s30 }
 0x88d   : > { %v1479_v4 = vpop.permute.xlu0 %1478 }
 0x88e   : > { %v1481_v5 = vmul.f32 %v1899_v2, %v1479_v4 }
 0x890   : > { %1483 = vrot.lane.b32.xlu0 %v1481_v5, %s1915_s30 }
 0x8fc   : > { %v1366_v6 = vpop.permute.xlu1 %1365 }
 0x8fd   : > { %v1368_v7 = vadd.f32 %v1366_v6, %v1267_v23 }
 0x8ff   : > { %1900 = vtanh.f32 %v1368_v7 }
 0x902   : > { %v1484_v8 = vpop.permute.xlu0 %1483 }
 0x903   : > { %v1486_v9 = vadd.f32 %v1484_v8, %v1385_v22 }
 0x905   : > { %1902 = vtanh.f32 %v1486_v9 }
 0x90c   : > { %v1901_v10 = vpop.eup %1900 }
 0x90d   : > { %1371 = vrot.lane.b32.xlu1 %v1901_v10, %s1915_s30 }
 0x912   : > { %v1903_v11 = vpop.eup %1902 }
 0x913   : > { %1489 = vrot.lane.b32.xlu0 %v1903_v11, %s1915_s30 }
 0x97f   : > { %v1372_v20 = vpop.permute.xlu1 %1371 }
 0x980   : > { %v1374_v28 = vsub.f32 %v2279_v55, %v1372_v20 }
 0x982   : > { %1376 = vrot.lane.b32.xlu1 %v1374_v28, %s1917_s17 }
 0x985   : > { %v1490_v30 = vpop.permute.xlu0 %1489 }
 0x986   : > { %v1492_v31 = vsub.f32 %v2287_v12, %v1490_v30  ;;  %1864 = vperm.xlu1 %1862, %v1863_v29  }
 0x988   : > { %1494 = vrot.lane.b32.xlu0 %v1492_v31, %s1917_s17 }
 0x9f4   : > { %v1377_v32 = vpop.permute.xlu1 %1376 }
 0x9f5   : > { %v1379_v33 = vmul.f32 %v1897_v0, %v1377_v32 }
 0x9f7   : > { %1381 = vrot.lane.b32.xlu0 %v1379_v33, %s1917_s17 }
 0x9fa   : > { %v1495_v18 = vpop.permute.xlu0 %1494 }
 0x9fb   : > { %v1497_v34 = vmul.f32 %v1899_v2, %v1495_v18  ;;  %1503 = vrot.lane.b32.xlu0 %v2279_v55, %s1915_s30 }
 0x9fd   : > { %1499 = vrot.lane.b32.xlu1 %v1497_v34, %s1917_s17 }
 0xa01   : > { %1518 = vrot.lane.b32.xlu1 %v2287_v12, %s1915_s30  ;;  %v1865_v35 = vpop.permute.xlu1 %1864 }
 0xa02   : > { %v1866_v38 = vunpack.i.l.bf16 %v1865_v35  ;;  %v1867_v45 = vunpack.i.h.bf16 %v1865_v35 }
 0xa69   : > { %v1382_v3 = vpop.permute.xlu0 %1381 }
 0xa6a   : > { %v1384_v36 = vadd.f32 %v1901_v10, %v1382_v3 }
 0xa6d   : > { %v1504_v37 = vpop.permute.xlu0 %1503 }
 0xa6e   : > { %v1506_v39 = vsub.f32 %v1384_v36, %v1504_v37 }
 0xa6f   : > { %v1500_v40 = vpop.permute.xlu1 %1499 }
 0xa70   : > { %v1512_v41 = vmul.f32 %v1866_v38, %v1506_v39  ;;  %v1502_v42 = vadd.f32 %v1903_v11, %v1500_v40 }
 0xa72   : > { %1514 = vrot.lane.b32.xlu0 %v1512_v41, %s1915_s30 }
 0xa73   : > { %v1519_v43 = vpop.permute.xlu1 %1518 }
 0xa74   : > { %v1521_v46 = vsub.f32 %v1502_v42, %v1519_v43 }
 0xa76   : > { %v1527_v47 = vmul.f32 %v1867_v45, %v1521_v46 }
 0xa78   : > { %1529 = vrot.lane.b32.xlu1 %v1527_v47, %s1915_s30 }
 0xae4   : > { %v1515_v48 = vpop.permute.xlu0 %1514 }
 0xae5   : > { %v1517_v50 = vadd.f32 %v1515_v48, %v2279_v55 }
 0xae7   : > { %v1533_v51 = vmul.f32 %v1866_v38, %v1517_v50  ;;  %1538 = vst.msk [vmem:[#allocation2] sm:$0xff] %vm486_vm1, %v1517_v50 }
 0xae9   : > { %1690 = vst.msk [vmem:[%s2012_s20 + $0x10] sm:$0xff] %vm486_vm1, %v1533_v51 }
 0xaea   : > { %v1530_v52 = vpop.permute.xlu1 %1529 }
 0xaeb   : > { %v1532_v53 = vadd.f32 %v1530_v52, %v2287_v12 }
 0xaed   : > { %v1536_v56 = vmul.f32 %v1867_v45, %v1532_v53  ;;  %1539 = vst.msk [vmem:[#allocation3] sm:$0xff] %vm486_vm1, %v1532_v53 }
 0xaef   : > { %1537 = vst.msk [vmem:[%s2017_s26] sm:$0xff] %vm486_vm1, %v1536_v56 }
 0xaf0 PF: > { %s2346_s23 = sld [smem:[#allocation6_spill]] }
 0xaf6   : > { %s23_s21 = sadd.s32 1, %s2346_s23  }
 0xaf7   : > { %p20_p6 = scmp.ge.s32.totalorder %s23_s21, 5  }
 0xaf9   :  { %22 = sbr.rel (!%p20_p6) target bundleno = 1 (0x1), region = 121 }

</bundles_post_ra>
